<compile_context>
chip_gen: v5e
topology: v5e:2x2
jax: 0.10.0
libtpu: 0.0.40
codegen_flags: <defaults>
</compile_context>

<pallas_src>
import functools
from typing import NamedTuple

import jax
import jax.numpy as jnp
from jax.experimental import pallas as pl
from jax.experimental.pallas import tpu as pltpu

PREDICATE_POINTER = "predicate_pointer"
TYPE_POINTER = "type_pointer"

EMB_DIM = 32          # args.emb_dim
PTR_N_HIDDEN = 2      # args.ptr_n_hidden -> hidden dims 32 -> 16 -> 8 -> 1
H1 = EMB_DIM // 2     # 16
H2 = EMB_DIM // 4     # 8
TILE_V = 256          # vocab tile width per grid step (lane-dense, >=2 vregs wide)

# f32 by default so the numerical check against the f32 reference stays tight.
# On v6e / v7x set to jnp.bfloat16: the cast below happens BEFORE tanh and feeds
# the MXU inputs, so it actually buys EUP/MXU throughput (re-validate tolerances).
# On v5e keep f32 (no bf16 VPU/EUP path).
COMPUTE_DTYPE = jnp.float32


class PointerMeta(NamedTuple):
    bt: int
    emb_dim: int
    h1: int
    h2: int
    tv: int
    n_tiles: int
    v_pred: int
    vp_pred: int
    v_type: int
    vp_type: int


# ---------------------------------------------------------------------------
# Kernel: one vocab tile (one head here) per grid step.
#   t   = tanh(ctx_rep + emb_tile)          (E,  BT*TV)
#   h1  = relu(W1 @ t + b1)                 (H1, BT*TV)
#   h2  = relu(W2 @ h1 + b2)                (H2, BT*TV)
#   out = sum(h2 * wo, sublanes) + bo       (1,  BT*TV)   lane-dense flat store
# ---------------------------------------------------------------------------
def _pointer_kernel(head_ids_ref, ctx_rep_ref, emb_ref,
                    w1_ref, b1_ref, w2_ref, b2_ref, wo_ref, bo_ref,
                    out_ref):
    j = pl.program_id(0)
    head = head_ids_ref[j]                       # which head owns this vocab tile

    cd = COMPUTE_DTYPE
    f32 = jnp.float32

    # Cast BEFORE the transcendental so bf16 (when enabled) reaches the EUP.
    t = jnp.tanh((ctx_rep_ref[...] + emb_ref[0]).astype(cd))          # (E, N)

    h = jnp.dot(w1_ref[0].astype(cd), t,
                preferred_element_type=f32) + b1_ref[0]                # (H1, N)
    h = jnp.maximum(h, 0.0).astype(cd)
    h = jnp.dot(w2_ref[0].astype(cd), h,
                preferred_element_type=f32) + b2_ref[0]                # (H2, N)
    h = jnp.maximum(h, 0.0)

    # Final Linear(H2 -> 1): VPU multiply + cross-sublane (XLU) reduce + SMEM bias.
    o_flat = jnp.sum(h * wo_ref[0], axis=0, keepdims=True) + bo_ref[head]  # (1, N)

    # Single unmasked, 4096-lane-wide store; (BT, V) reassembly happens in the
    # wrapper with a trivial reshape/transpose.
    out_ref[...] = o_flat.astype(out_ref.dtype)


# ---------------------------------------------------------------------------
# Forward: grid-invariant context work in XLA, pointer heads in one pallas_call
# ---------------------------------------------------------------------------
@functools.partial(jax.jit, static_argnames=("meta",))
def stacked_pointer_networks_forward(encoder_ctx, decoder_h, packed, meta):
    b, t, e = decoder_h.shape
    bt = b * t
    assert bt == meta.bt and e == meta.emb_dim

    tv, n_tiles = meta.tv, meta.n_tiles
    h1, h2 = meta.h1, meta.h2
    n = bt * tv

    # cat([encoder_ctx.expand(decoder_h.shape), decoder_h], -1) -> context_linear.
    # dropout(context) is the eval-mode identity.
    x = jnp.concatenate(
        [jnp.broadcast_to(encoder_ctx, decoder_h.shape), decoder_h], axis=-1)
    x2 = x.reshape(bt, 2 * e)
    ctx = x2 @ packed["wc"].T + packed["bc"]                       # (BT, E)
    # Replicate context row m across lane-block m of the (E, BT*TV) slab once,
    # outside the grid loop (grid-invariant; constant index_map keeps it resident).
    ctx_rep = jnp.repeat(ctx.T, tv, axis=1)                        # (E, BT*TV)

    grid_spec = pltpu.PrefetchScalarGridSpec(
        num_scalar_prefetch=1,                 # head_ids: vocab tile -> head index
        grid=(n_tiles,),
        in_specs=[
            pl.BlockSpec((e, n), lambda j, hid: (0, 0)),               # ctx_rep
            pl.BlockSpec((1, e, n), lambda j, hid: (j, 0, 0)),         # emb_tiled
            pl.BlockSpec((1, h1, e), lambda j, hid: (hid[j], 0, 0)),   # w1
            pl.BlockSpec((1, h1, 1), lambda j, hid: (hid[j], 0, 0)),   # b1
            pl.BlockSpec((1, h2, h1), lambda j, hid: (hid[j], 0, 0)),  # w2
            pl.BlockSpec((1, h2, 1), lambda j, hid: (hid[j], 0, 0)),   # b2
            pl.BlockSpec((1, h2, 1), lambda j, hid: (hid[j], 0, 0)),   # wo^T
            pl.BlockSpec(memory_space=pltpu.MemorySpace.SMEM),         # bo (2,)
        ],
        out_specs=pl.BlockSpec((1, n), lambda j, hid: (0, j)),
    )

    out = pl.pallas_call(
        _pointer_kernel,
        out_shape=jax.ShapeDtypeStruct((1, n_tiles * n), jnp.float32),
        grid_spec=grid_spec,
        compiler_params=pltpu.CompilerParams(
            dimension_semantics=("parallel",)),
    )(packed["head_ids"], ctx_rep, packed["emb_tiled"],
      packed["w1"], packed["b1"], packed["w2"], packed["b2"], packed["wo_t"],
      packed["bo"])

    # (1, n_tiles*BT*TV) -> (BT, n_tiles*TV); padded vocab lanes are sliced away.
    full = out.reshape(n_tiles, bt, tv).transpose(1, 0, 2).reshape(bt, n_tiles * tv)
    return {
        PREDICATE_POINTER: full[:, :meta.v_pred],
        TYPE_POINTER: full[:, meta.vp_pred:meta.vp_pred + meta.v_type],
    }


# ---------------------------------------------------------------------------
# Parameter packing: stack heads, pad vocabs to TILE_V multiples, pre-tile emb.
# ---------------------------------------------------------------------------
def pack_params(params, bt, tv=TILE_V):
    e = params["wc"].shape[0]

    def pad_vocab(emb):
        v = emb.shape[0]
        vp = ((v + tv - 1) // tv) * tv
        if vp != v:
            emb = jnp.pad(emb, ((0, vp - v), (0, 0)))
        return emb, v, vp

    emb_pred, v_pred, vp_pred = pad_vocab(params["pred"]["emb"])
    emb_type, v_type, vp_type = pad_vocab(params["type"]["emb"])
    n_tiles = (vp_pred + vp_type) // tv

    emb_cat = jnp.concatenate([emb_pred, emb_type], axis=0).T        # (E, Vp_total)
    blocks = emb_cat.reshape(e, n_tiles, tv).transpose(1, 0, 2)      # (n_tiles, E, tv)
    # TODO(synk): for large B*T pass emb as (n_tiles, E, tv) and replicate in-kernel
    # (or add a BT grid axis) so HBM/VMEM stays proportional to vocab, not vocab*BT.
    emb_tiled = jnp.tile(blocks, (1, 1, bt))                         # (n_tiles, E, BT*tv)

    head_ids = jnp.array([0] * (vp_pred // tv) + [1] * (vp_type // tv),
                         dtype=jnp.int32)

    def stack(name, reshape=None):
        pa = params["pred"][name]
        ta = params["type"][name]
        if reshape is not None:
            pa, ta = reshape(pa), reshape(ta)
        return jnp.stack([pa, ta], axis=0)

    packed = {
        "head_ids": head_ids,
        "wc": params["wc"],                                # (E, 2E) PyTorch (out,in)
        "bc": params["bc"],                                # (E,)
        "emb_tiled": emb_tiled,                            # (n_tiles, E, BT*tv)
        "w1": stack("w1"),                                 # (2, H1, E)
        "b1": stack("b1", lambda v: v.reshape(-1, 1)),     # (2, H1, 1)
        "w2": stack("w2"),                                 # (2, H2, H1)
        "b2": stack("b2", lambda v: v.reshape(-1, 1)),     # (2, H2, 1)
        "wo_t": stack("wo", lambda v: v.reshape(-1, 1)),   # (2, H2, 1)  (= wo.T)
        "bo": stack("bo").reshape(2).astype(jnp.float32),  # (2,) SMEM scalars
    }
    meta = PointerMeta(bt=bt, emb_dim=e,
                       h1=packed["w1"].shape[1], h2=packed["w2"].shape[1],
                       tv=tv, n_tiles=n_tiles,
                       v_pred=v_pred, vp_pred=vp_pred,
                       v_type=v_type, vp_type=vp_type)
    return packed, meta


# ---------------------------------------------------------------------------
# Pure-JAX reference (mirrors the PyTorch graph) for validation
# ---------------------------------------------------------------------------
def reference_forward(encoder_ctx, decoder_h, params):
    b, t, e = decoder_h.shape
    x = jnp.concatenate(
        [jnp.broadcast_to(encoder_ctx, decoder_h.shape), decoder_h], axis=-1)
    ctx = jnp.einsum("bti,oi->bto", x, params["wc"]) + params["bc"]   # (B, T, E)
    ctx = ctx[:, :, None, :]                                          # unsqueeze(2)

    def head(hp):
        z = jnp.tanh(ctx + hp["emb"][None, None, :, :])               # (B, T, V, E)
        z = jnp.maximum(jnp.einsum("btve,he->btvh", z, hp["w1"]) + hp["b1"], 0.0)
        z = jnp.maximum(jnp.einsum("btvh,gh->btvg", z, hp["w2"]) + hp["b2"], 0.0)
        z = jnp.einsum("btvg,og->btvo", z, hp["wo"])[..., 0] + hp["bo"]
        return z.reshape(b * t, -1)                                   # squeeze + Flatten

    return {PREDICATE_POINTER: head(params["pred"]),
            TYPE_POINTER: head(params["type"])}


# ---------------------------------------------------------------------------
# Deterministic parameter init (PyTorch layouts)
# ---------------------------------------------------------------------------
def init_params(key, emb_dim, v_pred, v_type):
    def nrm(k, shape, scale=0.1):
        return scale * jax.random.normal(k, shape, dtype=jnp.float32)

    h1, h2 = emb_dim // 2, emb_dim // 4
    ks = jax.random.split(key, 16)

    def head(kseq, v):
        return {
            "emb": nrm(kseq[0], (v, emb_dim)),      # nn.Embedding weight (V, E)
            "w1": nrm(kseq[1], (h1, emb_dim)),      # nn.Linear weight (out, in)
            "b1": nrm(kseq[2], (h1,)),
            "w2": nrm(kseq[3], (h2, h1)),
            "b2": nrm(kseq[4], (h2,)),
            "wo": nrm(kseq[5], (1, h2)),
            "bo": nrm(kseq[6], ()),
        }

    return {
        "wc": nrm(ks[0], (emb_dim, 2 * emb_dim)),   # context_linear weight (out, in)
        "bc": nrm(ks[1], (emb_dim,)),
        "pred": head(ks[2:9], v_pred),
        "type": head(ks[9:16], v_type),
    }


if __name__ == "__main__":
    B, T, E = 2, 8, EMB_DIM
    V_PRED, V_TYPE = 128, 256

    key = jax.random.PRNGKey(0)
    k_enc, k_dec, k_par = jax.random.split(key, 3)

    encoder_ctx = jax.random.normal(k_enc, (B, 1, E), dtype=jnp.float32)
    decoder_h = jax.random.normal(k_dec, (B, T, E), dtype=jnp.float32)

    params = init_params(k_par, E, V_PRED, V_TYPE)
    packed, meta = pack_params(params, bt=B * T)

    # TODO(synk): nn.Dropout is stochastic in train mode; here it is the eval-mode identity.
    out = stacked_pointer_networks_forward(encoder_ctx, decoder_h, packed, meta)
    out = jax.block_until_ready(out)

    ref = reference_forward(encoder_ctx, decoder_h, params)
    for name, v in ((PREDICATE_POINTER, V_PRED), (TYPE_POINTER, V_TYPE)):
        assert out[name].shape == (B * T, v), (name, out[name].shape)
        assert jnp.allclose(out[name], ref[name], rtol=1e-3, atol=1e-3), name

    print("KERNEL_OK")
</pallas_src>

<mosaic_0001>
module attributes {stable_mosaic.version = 11 : i64} {
  func.func @_pointer_kernel(%arg0: i32, %arg1: memref<2xi32, #tpu.memory_space<smem>>, %arg2: memref<32x4096xf32, #tpu.memory_space<vmem>>, %arg3: memref<1x32x4096xf32, #tpu.memory_space<vmem>>, %arg4: memref<1x16x32xf32, #tpu.memory_space<vmem>>, %arg5: memref<1x16x1xf32, #tpu.memory_space<vmem>>, %arg6: memref<1x8x16xf32, #tpu.memory_space<vmem>>, %arg7: memref<1x8x1xf32, #tpu.memory_space<vmem>>, %arg8: memref<1x8x1xf32, #tpu.memory_space<vmem>>, %arg9: memref<2xf32, #tpu.memory_space<smem>>, %arg10: memref<1x4096xf32, #tpu.memory_space<vmem>>) attributes {dimension_semantics = [#tpu.dimension_semantics<parallel>], iteration_bounds = array<i64: 2>, scalar_prefetch = 1 : i64, scratch_operands = 0 : i64, tpu.core_type = #tpu.core_type<tc>, window_params = [{pipeline_mode = #tpu.pipeline_mode<synchronous>, transform_indices = @transform_0, window_bounds = array<i64: 32, 4096>}, {transform_indices = @transform_1, window_bounds = array<i64: 1, 32, 4096>}, {transform_indices = @transform_2, window_bounds = array<i64: 1, 16, 32>}, {transform_indices = @transform_3, window_bounds = array<i64: 1, 16, 1>}, {transform_indices = @transform_4, window_bounds = array<i64: 1, 8, 16>}, {transform_indices = @transform_5, window_bounds = array<i64: 1, 8, 1>}, {transform_indices = @transform_6, window_bounds = array<i64: 1, 8, 1>}, {transform_indices = @transform_7, window_bounds = array<i64: 2>}, {transform_indices = @transform_8, window_bounds = array<i64: 1, 4096>}]} {
    %0 = arith.index_cast %arg0 : i32 to index
    %1 = memref.load %arg1[%0] : memref<2xi32, #tpu.memory_space<smem>>
    %c0 = arith.constant 0 : index
    %c0_0 = arith.constant 0 : index
    %2 = vector.load %arg2[%c0, %c0_0] : memref<32x4096xf32, #tpu.memory_space<vmem>>, vector<32x4096xf32>
    %c0_1 = arith.constant 0 : index
    %c0_2 = arith.constant 0 : index
    %c0_3 = arith.constant 0 : index
    %3 = vector.load %arg3[%c0_1, %c0_2, %c0_3] : memref<1x32x4096xf32, #tpu.memory_space<vmem>>, vector<1x32x4096xf32>
    %4 = vector.shape_cast %3 : vector<1x32x4096xf32> to vector<32x4096xf32>
    %5 = arith.addf %2, %4 : vector<32x4096xf32>
    %6 = math.tanh %5 : vector<32x4096xf32>
    %c0_4 = arith.constant 0 : index
    %c0_5 = arith.constant 0 : index
    %c0_6 = arith.constant 0 : index
    %7 = vector.load %arg4[%c0_4, %c0_5, %c0_6] : memref<1x16x32xf32, #tpu.memory_space<vmem>>, vector<1x16x32xf32>
    %8 = vector.shape_cast %7 : vector<1x16x32xf32> to vector<16x32xf32>
    %cst = arith.constant dense<0.000000e+00> : vector<16x4096xf32>
    %9 = tpu.matmul %8, %6, %cst {dimension_numbers = #tpu.dot_dimension_numbers<[1], [0], [0], [1], [0, 0, 1, 1], [], []>} : vector<16x32xf32>, vector<32x4096xf32>, vector<16x4096xf32> -> vector<16x4096xf32>
    %c0_7 = arith.constant 0 : index
    %c0_8 = arith.constant 0 : index
    %c0_9 = arith.constant 0 : index
    %10 = vector.load %arg5[%c0_7, %c0_8, %c0_9] : memref<1x16x1xf32, #tpu.memory_space<vmem>>, vector<1x16x1xf32>
    %11 = vector.shape_cast %10 : vector<1x16x1xf32> to vector<16x1xf32>
    %12 = vector.broadcast %11 : vector<16x1xf32> to vector<16x4096xf32>
    %13 = arith.addf %9, %12 : vector<16x4096xf32>
    %cst_10 = arith.constant 0.000000e+00 : f32
    %14 = vector.broadcast %cst_10 : f32 to vector<16x4096xf32>
    %15 = arith.maximumf %13, %14 : vector<16x4096xf32>
    %c0_11 = arith.constant 0 : index
    %c0_12 = arith.constant 0 : index
    %c0_13 = arith.constant 0 : index
    %16 = vector.load %arg6[%c0_11, %c0_12, %c0_13] : memref<1x8x16xf32, #tpu.memory_space<vmem>>, vector<1x8x16xf32>
    %17 = vector.shape_cast %16 : vector<1x8x16xf32> to vector<8x16xf32>
    %cst_14 = arith.constant dense<0.000000e+00> : vector<8x4096xf32>
    %18 = tpu.matmul %17, %15, %cst_14 {dimension_numbers = #tpu.dot_dimension_numbers<[1], [0], [0], [1], [0, 0, 1, 1], [], []>} : vector<8x16xf32>, vector<16x4096xf32>, vector<8x4096xf32> -> vector<8x4096xf32>
    %c0_15 = arith.constant 0 : index
    %c0_16 = arith.constant 0 : index
    %c0_17 = arith.constant 0 : index
    %19 = vector.load %arg7[%c0_15, %c0_16, %c0_17] : memref<1x8x1xf32, #tpu.memory_space<vmem>>, vector<1x8x1xf32>
    %20 = vector.shape_cast %19 : vector<1x8x1xf32> to vector<8x1xf32>
    %21 = vector.broadcast %20 : vector<8x1xf32> to vector<8x4096xf32>
    %22 = arith.addf %18, %21 : vector<8x4096xf32>
    %cst_18 = arith.constant 0.000000e+00 : f32
    %23 = vector.broadcast %cst_18 : f32 to vector<8x4096xf32>
    %24 = arith.maximumf %22, %23 : vector<8x4096xf32>
    %c0_19 = arith.constant 0 : index
    %c0_20 = arith.constant 0 : index
    %c0_21 = arith.constant 0 : index
    %25 = vector.load %arg8[%c0_19, %c0_20, %c0_21] : memref<1x8x1xf32, #tpu.memory_space<vmem>>, vector<1x8x1xf32>
    %26 = vector.shape_cast %25 : vector<1x8x1xf32> to vector<8x1xf32>
    %27 = vector.broadcast %26 : vector<8x1xf32> to vector<8x4096xf32>
    %28 = arith.mulf %24, %27 : vector<8x4096xf32>
    %cst_22 = arith.constant dense<0.000000e+00> : vector<4096xf32>
    %29 = vector.multi_reduction <add>, %28, %cst_22 [0] : vector<8x4096xf32> to vector<4096xf32>
    %30 = vector.shape_cast %29 : vector<4096xf32> to vector<1x4096xf32>
    %31 = arith.index_cast %1 : i32 to index
    %32 = memref.load %arg9[%31] : memref<2xf32, #tpu.memory_space<smem>>
    %33 = vector.broadcast %32 : f32 to vector<1x4096xf32>
    %34 = arith.addf %30, %33 : vector<1x4096xf32>
    %c0_23 = arith.constant 0 : index
    %c0_24 = arith.constant 0 : index
    %35 = vector.load %arg10[%c0_23, %c0_24] : memref<1x4096xf32, #tpu.memory_space<vmem>>, vector<1x4096xf32>
    tpu.vector_store %arg10[%c0_23, %c0_24], %34 {strides = array<i32>} : memref<1x4096xf32, #tpu.memory_space<vmem>>, vector<1x4096xf32>,
    return
  }
  func.func @transform_0(%arg0: i32, %arg1: memref<2xi32, #tpu.memory_space<smem>>) -> (i32, i32) {
    %c0_i32 = arith.constant 0 : i32
    %c0_i32_0 = arith.constant 0 : i32
    %c0_i32_1 = arith.constant 0 : i32
    return %c0_i32, %c0_i32_0 : i32, i32
  }
  func.func @transform_1(%arg0: i32, %arg1: memref<2xi32, #tpu.memory_space<smem>>) -> (i32, i32, i32) {
    %c0_i32 = arith.constant 0 : i32
    %c0_i32_0 = arith.constant 0 : i32
    %c0_i32_1 = arith.constant 0 : i32
    return %arg0, %c0_i32, %c0_i32_0 : i32, i32, i32
  }
  func.func @transform_2(%arg0: i32, %arg1: memref<2xi32, #tpu.memory_space<smem>>) -> (i32, i32, i32) {
    %0 = arith.index_cast %arg0 : i32 to index
    %1 = memref.load %arg1[%0] : memref<2xi32, #tpu.memory_space<smem>>
    %c0_i32 = arith.constant 0 : i32
    %c0_i32_0 = arith.constant 0 : i32
    %c0_i32_1 = arith.constant 0 : i32
    return %1, %c0_i32, %c0_i32_0 : i32, i32, i32
  }
  func.func @transform_3(%arg0: i32, %arg1: memref<2xi32, #tpu.memory_space<smem>>) -> (i32, i32, i32) {
    %0 = arith.index_cast %arg0 : i32 to index
    %1 = memref.load %arg1[%0] : memref<2xi32, #tpu.memory_space<smem>>
    %c0_i32 = arith.constant 0 : i32
    %c0_i32_0 = arith.constant 0 : i32
    %c0_i32_1 = arith.constant 0 : i32
    return %1, %c0_i32, %c0_i32_0 : i32, i32, i32
  }
  func.func @transform_4(%arg0: i32, %arg1: memref<2xi32, #tpu.memory_space<smem>>) -> (i32, i32, i32) {
    %0 = arith.index_cast %arg0 : i32 to index
    %1 = memref.load %arg1[%0] : memref<2xi32, #tpu.memory_space<smem>>
    %c0_i32 = arith.constant 0 : i32
    %c0_i32_0 = arith.constant 0 : i32
    %c0_i32_1 = arith.constant 0 : i32
    return %1, %c0_i32, %c0_i32_0 : i32, i32, i32
  }
  func.func @transform_5(%arg0: i32, %arg1: memref<2xi32, #tpu.memory_space<smem>>) -> (i32, i32, i32) {
    %0 = arith.index_cast %arg0 : i32 to index
    %1 = memref.load %arg1[%0] : memref<2xi32, #tpu.memory_space<smem>>
    %c0_i32 = arith.constant 0 : i32
    %c0_i32_0 = arith.constant 0 : i32
    %c0_i32_1 = arith.constant 0 : i32
    return %1, %c0_i32, %c0_i32_0 : i32, i32, i32
  }
  func.func @transform_6(%arg0: i32, %arg1: memref<2xi32, #tpu.memory_space<smem>>) -> (i32, i32, i32) {
    %0 = arith.index_cast %arg0 : i32 to index
    %1 = memref.load %arg1[%0] : memref<2xi32, #tpu.memory_space<smem>>
    %c0_i32 = arith.constant 0 : i32
    %c0_i32_0 = arith.constant 0 : i32
    %c0_i32_1 = arith.constant 0 : i32
    return %1, %c0_i32, %c0_i32_0 : i32, i32, i32
  }
  func.func @transform_7(%arg0: i32, %arg1: memref<2xi32, #tpu.memory_space<smem>>) -> i32 {
    %c0_i32 = arith.constant 0 : i32
    %c0_i32_0 = arith.constant 0 : i32
    return %c0_i32 : i32
  }
  func.func @transform_8(%arg0: i32, %arg1: memref<2xi32, #tpu.memory_space<smem>>) -> (i32, i32) {
    %c0_i32 = arith.constant 0 : i32
    %c0_i32_0 = arith.constant 0 : i32
    return %c0_i32, %arg0 : i32, i32
  }
}

</mosaic_0001>

<bundles_post_ra>
// kernel: stacked_pointer_networks_forward.1
= control target key start
LH: loop header
LB: loop body
LE: loop exit
PB: predicated region body
PF: predicated region fallthrough
CT: control target
= control target key end

     0   :  { %s3400_s12 = smov [#allocation3]   ;;  %s4480_s0 = inlined_call_operand.vmem [shape: s32[2], index: 0, kind: input, shape index: {}]   ;;  %s4481_s1 = inlined_call_operand.vmem [shape: f32[32,4096], index: 1, kind: input, shape index: {}]   ;;  %s4482_s2 = inlined_call_operand.vmem [shape: f32[2,32,4096], index: 2, kind: input, shape index: {}]   ;;  %s4483_s3 = inlined_call_operand.vmem [shape: f32[2,16,32], index: 3, kind: input, shape index: {}]   ;;  %s4484_s4 = inlined_call_operand.vmem [shape: f32[2,16,1], index: 4, kind: input, shape index: {}]   ;;  %s4485_s5 = inlined_call_operand.vmem [shape: f32[2,8,16], index: 5, kind: input, shape index: {}]   ;;  %s4486_s6 = inlined_call_operand.vmem [shape: f32[2,8,1], index: 6, kind: input, shape index: {}]   ;;  %s4487_s7 = inlined_call_operand.vmem [shape: f32[2,8,1], index: 7, kind: input, shape index: {}]   ;;  %s4488_s8 = inlined_call_operand.vmem [shape: f32[2], index: 8, kind: input, shape index: {}]   ;;  %s4489_s9 = inlined_call_operand.vmem [shape: f32[1,8192], index: 9, kind: output, shape index: {}]  }
   0x1   :  { %s15_s11 = sshll.u32 %s4480_s0, 4  ;;  %s16_s11 = int_to_ptr.vmem [resolvable:$true] %s15_s11 }
   0x2   :  { %18 = dma.vmem_to_smem %s16_s11, 16, %s3400_s12, [#allocation2] }
   0x3   :  { %3390 = dma.done.wait [#allocation2], 16 }
   0x4   :  { %3391 = vsyncadd [#allocation2], 4294967280 }
   0x5   :  { %21 = sfence }
   0x6   :  { %22 = vsyncpa [#allocation5], 0  ;;  %s3456_s13 = smov 0  }
   0x7 LB: > { %s3462_s14 = sadd.s32 4294967295, %s3398_s13   ;;  %p2962_p0 = scmp.ge.s32.totalorder %s3398_s13, 1  ;;  %s3398_s13 = sphi %s3456_s13, %s28_s13  }
   0x8   : > { %p267_p1 = scmp.lt.s32.totalorder %s3398_s13, 3  ;;  %s282_s16 = sshll.u32 %s4488_s8, 4  ;;  %s283_s16 = int_to_ptr.vmem [resolvable:$true] %s282_s16 }
   0x9   : > { %p3086_p3 = scmp.eq.s32.totalorder %s3462_s14, 0  ;;  %s3401_s17 = smov [#allocation4]  }
   0xa   : > { %p268_p2 = pnand %p2962_p0, %p267_p1 }
   0xc   : > { %p3082_p4 = pneg %p268_p2  ;;  %350 = sbr.rel (%p268_p2) target bundleno = 469 (0x1d5), region = 52 }
   0xe   : > { %p3083_p5 = pnand %p3086_p3, %p3082_p4 }
  0x10   : > { %3085 = dma.vmem_to_smem (!%p3083_p5), %s283_s16, 16, %s3401_s17, [#allocation5]  }
  0x11   : > { %3393 = dma.done.wait (%p3086_p3), [#allocation5], 16  }
  0x12   : > { %3395 = vsyncadd (%p3086_p3), [#allocation5], 4294967280 }
  0x13   : > { %357 = sfence }
  0x14   : > { %p412_p6 = scmp.lt.s32.totalorder %s3462_s14, 1  ;;  %s3472_s18 = sld [smem:[#allocation3 + %s3462_s14]]  ;;  %v3402_v0 = vmov 0   ;;  %v551_v1 = vld [vmem:[%s4481_s1 + $0x300] sm:$0xff]  ;;  %v552_v2 = vld [vmem:[%s4481_s1 + $0x308] sm:$0xff]  ;;  %v553_v3 = vld [vmem:[%s4481_s1 + $0x310] sm:$0xff] }
  0x15   : > { %3099 = vset.pattern.permute.xlu0 %v3402_v0  ;;  %3100 = vset.pattern.permute.xlu1 %v3402_v0  ;;  %s3485_s27 = sld [smem:[#allocation3 + %s3462_s14]]  ;;  %v554_v4 = vld [vmem:[%s4481_s1 + $0x318] sm:$0xff]  ;;  %v519_v5 = vld [vmem:[%s4481_s1 + $0x200] sm:$0xff]  ;;  %v520_v6 = vld [vmem:[%s4481_s1 + $0x208] sm:$0xff]  ;;  %vm981_vm0 = vcmask 261120   ;;  %vm1795_vm1 = vcmask 130048  }
  0x16   : > { %s413_s19 = scalar_select %p412_p6, %s3462_s14, 1  ;;  %v521_v17 = vld [vmem:[%s4481_s1 + $0x210] sm:$0xff]  ;;  %v522_v20 = vld [vmem:[%s4481_s1 + $0x218] sm:$0xff]  ;;  %v487_v23 = vld [vmem:[%s4481_s1 + $0x100] sm:$0xff]  ;;  %vm2795_vm2 = vcmask 1040384   ;;  %vm2797_vm3 = vcmask 1042434  }
  0x17   : > { %v488_v26 = vld [vmem:[%s4481_s1 + $0x108] sm:$0xff]  ;;  %v489_v29 = vld [vmem:[%s4481_s1 + $0x110] sm:$0xff]  ;;  %v490_v32 = vld [vmem:[%s4481_s1 + $0x118] sm:$0xff]  ;;  %s4200_s21 = sld [smem:[#allocation3 + %s3462_s14]]  ;;  %vm2799_vm4 = vcmask 1041408   ;;  %vm2801_vm5 = vcmask 1044484  }
  0x18   : > { %s3075_s20 = sshll.u32 %s413_s19, 10  ;;  %v455_v36 = vld [vmem:[%s4481_s1] sm:$0xff]  ;;  %v456_v40 = vld [vmem:[%s4481_s1 + $0x8] sm:$0xff]  ;;  %v457_v44 = vld [vmem:[%s4481_s1 + $0x10] sm:$0xff]  ;;  %s2976_s11 = sshll.u32 %s3462_s14, 5  ;;  %vm2803_vm6 = vcmask 1046534  }
  0x19   : > { %s3490_s30 = scalar_lea.vmem %s4482_s2, %s3075_s20  ;;  %v458_v48 = vld [vmem:[%s4481_s1 + $0x18] sm:$0xff]  ;;  %v557_v52 = vld [vmem:[%s4481_s1 + $0x330] sm:$0xff]  ;;  %v555_v60 = vld [vmem:[%s4481_s1 + $0x320] sm:$0xff]  ;;  %s4187_s20 = sld [smem:[#allocation3 + %s3462_s14]]  ;;  %vm2805_vm7 = vcmask 1045508   ;;  %vm2807_vm8 = vcmask 1043456  }
  0x1a   : > { %v679_v7 = vld [vmem:[%s3490_s30 + $0x300] sm:$0xff]  ;;  %v680_v8 = vld [vmem:[%s3490_s30 + $0x308] sm:$0xff]  ;;  %v681_v9 = vld [vmem:[%s3490_s30 + $0x310] sm:$0xff]  ;;  %p425_p7 = scmp.lt.s32.totalorder %s3472_s18, 1  ;;  %p4387_p12 = scmp.lt.s32.totalorder %s2976_s11, 63 }
  0x1b   : > { %v807_v10 = vadd.f32 %v679_v7, %v551_v1  ;;  %v808_v11 = vadd.f32 %v680_v8, %v552_v2  ;;  %v809_v12 = vadd.f32 %v681_v9, %v553_v3  ;;  %v682_v13 = vld [vmem:[%s3490_s30 + $0x318] sm:$0xff]  ;;  %v647_v14 = vld [vmem:[%s3490_s30 + $0x200] sm:$0xff]  ;;  %v648_v15 = vld [vmem:[%s3490_s30 + $0x208] sm:$0xff]  ;;  %p418_p8 = scmp.lt.s32.totalorder %s3485_s27, 1 }
  0x1c   : > { %v810_v16 = vadd.f32 %v682_v13, %v554_v4  ;;  %v649_v18 = vld [vmem:[%s3490_s30 + $0x210] sm:$0xff]  ;;  %v775_v19 = vadd.f32 %v647_v14, %v519_v5  ;;  %v650_v21 = vld [vmem:[%s3490_s30 + $0x218] sm:$0xff]  ;;  %s4492_s18 = smov (!%p425_p7, %s3472_s18), 1  ;;  %v776_v22 = vadd.f32 %v648_v15, %v520_v6  ;;  %v615_v24 = vld [vmem:[%s3490_s30 + $0x100] sm:$0xff]  ;;  %s4502_s11 = smov (!%p4387_p12, %s2976_s11), 63 }
  0x1d   : > { %3101 = vtanh.f32 %v807_v10  ;;  %v777_v25 = vadd.f32 %v649_v18, %v521_v17  ;;  %v616_v27 = vld [vmem:[%s3490_s30 + $0x108] sm:$0xff]  ;;  %s3077_s26 = sshll.u32 %s4492_s18, 4  ;;  %v778_v28 = vadd.f32 %v650_v21, %v522_v20  ;;  %v617_v30 = vld [vmem:[%s3490_s30 + $0x110] sm:$0xff]  ;;  %v743_v31 = vadd.f32 %v615_v24, %v487_v23  ;;  %v618_v33 = vld [vmem:[%s3490_s30 + $0x118] sm:$0xff]  ;;  %s4494_s27 = smov (!%p418_p8, %s3485_s27), 1 }
  0x1e   : > { %3103 = vtanh.f32 %v808_v11  ;;  %s3533_s12 = scalar_lea.vmem %s4484_s4, %s3077_s26  ;;  %v744_v35 = vadd.f32 %v616_v27, %v488_v26  ;;  %v583_v37 = vld [vmem:[%s3490_s30] sm:$0xff]  ;;  %v745_v39 = vadd.f32 %v617_v30, %v489_v29  ;;  %v584_v41 = vld [vmem:[%s3490_s30 + $0x8] sm:$0xff]  ;;  %v746_v43 = vadd.f32 %v618_v33, %v490_v32  ;;  %v585_v45 = vld [vmem:[%s3490_s30 + $0x10] sm:$0xff]  ;;  %s3076_s29 = sshll.u32 %s4494_s27, 4 }
  0x1f   : > { %3105 = vtanh.f32 %v809_v12  ;;  %v970_v34 = vld [vmem:[%s3533_s12 + $0x8] sm:$0xff]  ;;  %v711_v47 = vadd.f32 %v583_v37, %v455_v36  ;;  %v586_v49 = vld [vmem:[%s3490_s30 + $0x18] sm:$0xff]  ;;  %v712_v51 = vadd.f32 %v584_v41, %v456_v40  ;;  %v685_v53 = vld [vmem:[%s3490_s30 + $0x330] sm:$0xff]  ;;  %v713_v55 = vadd.f32 %v585_v45, %v457_v44  ;;  %s3586_s19 = scalar_lea.vmem %s4483_s3, %s3076_s29  ;;  %p438_p10 = scmp.lt.s32.totalorder %s4187_s20, 1 }
  0x20   : > { %3107 = vtanh.f32 %v810_v16  ;;  %978 = vperm.xlu0 %3099, %v970_v34   ;;  %v558_v56 = vld [vmem:[%s4481_s1 + $0x338] sm:$0xff]  ;;  %v714_v59 = vadd.f32 %v586_v49, %v458_v48  ;;  %v683_v61 = vld [vmem:[%s3490_s30 + $0x320] sm:$0xff]  ;;  %v813_v63 = vadd.f32 %v685_v53, %v557_v52  ;;  %v556_v0 = vld [vmem:[%s4481_s1 + $0x328] sm:$0xff]  ;;  %p444_p11 = scmp.lt.s32.totalorder %s4200_s21, 1 }
  0x21   : > { %3109 = vtanh.f32 %v775_v19  ;;  %v686_v57 = vld [vmem:[%s3490_s30 + $0x338] sm:$0xff]  ;;  %v684_v1 = vld [vmem:[%s3490_s30 + $0x328] sm:$0xff]  ;;  %v525_v4 = vld [vmem:[%s4481_s1 + $0x230] sm:$0xff]  ;;  %v811_v8 = vadd.f32 %v683_v61, %v555_v60  ;;  %s4498_s20 = smov (!%p438_p10, %s4187_s20), 1 }
  0x22   : > { %3111 = vtanh.f32 %v776_v22  ;;  %v814_v3 = vadd.f32 %v686_v57, %v558_v56  ;;  %v653_v5 = vld [vmem:[%s3490_s30 + $0x230] sm:$0xff]  ;;  %v969_v6 = vld [vmem:[%s3533_s12] sm:$0xff]  ;;  %v526_v9 = vld [vmem:[%s4481_s1 + $0x238] sm:$0xff]  ;;  %v812_v12 = vadd.f32 %v684_v1, %v556_v0  ;;  %s2974_s12 = sshll.u32 %s4498_s20, 3  ;;  %s4500_s21 = smov (!%p444_p11, %s4200_s21), 1 }
  0x23   : > { %v3102_v38 = vpop.eup %3101  ;;  %3113 = vtanh.f32 %v777_v25  ;;  %v654_v10 = vld [vmem:[%s3490_s30 + $0x238] sm:$0xff]  ;;  %v523_v13 = vld [vmem:[%s4481_s1 + $0x220] sm:$0xff]  ;;  %v781_v16 = vadd.f32 %v653_v5, %v525_v4  ;;  %v524_v17 = vld [vmem:[%s4481_s1 + $0x228] sm:$0xff]  ;;  %s441_s24 = scalar_lea.vmem %s4486_s6, %s2974_s12  ;;  %s2975_s25 = sshll.u32 %s4500_s21, 3 }
  0x24   : > { %v3104_v42 = vpop.eup %3103  ;;  %1000 = vmatpush.msra.mxu0 %v3102_v38  ;;  %3115 = vtanh.f32 %v778_v28  ;;  %v651_v14 = vld [vmem:[%s3490_s30 + $0x220] sm:$0xff]  ;;  %v652_v18 = vld [vmem:[%s3490_s30 + $0x228] sm:$0xff]  ;;  %v782_v21 = vadd.f32 %v654_v10, %v526_v9  ;;  %v493_v30 = vld [vmem:[%s4481_s1 + $0x130] sm:$0xff]  ;;  %s447_s29 = scalar_lea.vmem %s4487_s7, %s2975_s25 }
  0x25   : > { %v3106_v46 = vpop.eup %3105  ;;  %1023 = vmatpush.msra.mxu1 %v3104_v42  ;;  %3117 = vtanh.f32 %v743_v31  ;;  %v3601_v20 = vld [vmem:[%s3586_s19] sm:$0xff]  ;;  %v779_v25 = vadd.f32 %v651_v14, %v523_v13  ;;  %v492_v26 = vld [vmem:[%s4481_s1 + $0x128] sm:$0xff]  ;;  %v780_v29 = vadd.f32 %v652_v18, %v524_v17  ;;  %v621_v31 = vld [vmem:[%s3490_s30 + $0x130] sm:$0xff] }
  0x26   : > { %v3108_v50 = vpop.eup %3107  ;;  %1046 = vmatpush.msra.mxu2 %v3106_v46  ;;  %3119 = vtanh.f32 %v744_v35  ;;  %v491_v22 = vld [vmem:[%s4481_s1 + $0x120] sm:$0xff]  ;;  %v620_v27 = vld [vmem:[%s3490_s30 + $0x128] sm:$0xff]  ;;  %v494_v34 = vld [vmem:[%s4481_s1 + $0x138] sm:$0xff]  ;;  %v749_v41 = vadd.f32 %v621_v31, %v493_v30 }
  0x27   : > { %v3110_v54 = vpop.eup %3109  ;;  %1069 = vmatpush.msra.mxu3 %v3108_v50  ;;  %3121 = vtanh.f32 %v745_v39  ;;  %v619_v23 = vld [vmem:[%s3490_s30 + $0x120] sm:$0xff]  ;;  %v622_v35 = vld [vmem:[%s3490_s30 + $0x138] sm:$0xff]  ;;  %v748_v37 = vadd.f32 %v620_v27, %v492_v26  ;;  %v460_v42 = vld [vmem:[%s4481_s1 + $0x28] sm:$0xff] }
  0x28   : > { %v3112_v58 = vpop.eup %3111  ;;  %1001 = vmatpush.msra.mxu0 %v3110_v54  ;;  %3123 = vtanh.f32 %v746_v43  ;;  %973 = vperm.xlu0 %3099, %v969_v6   ;;  %v747_v33 = vadd.f32 %v619_v23, %v491_v22  ;;  %v459_v38 = vld [vmem:[%s4481_s1 + $0x20] sm:$0xff]  ;;  %v588_v43 = vld [vmem:[%s3490_s30 + $0x28] sm:$0xff]  ;;  %v750_v45 = vadd.f32 %v622_v35, %v494_v34  ;;  %v461_v46 = vld [vmem:[%s4481_s1 + $0x30] sm:$0xff] }
  0x29   : > { %v3114_v62 = vpop.eup %3113  ;;  %1024 = vmatpush.msra.mxu1 %v3112_v58  ;;  %3125 = vtanh.f32 %v711_v47  ;;  %v587_v39 = vld [vmem:[%s3490_s30 + $0x20] sm:$0xff]  ;;  %v589_v47 = vld [vmem:[%s3490_s30 + $0x30] sm:$0xff]  ;;  %v462_v50 = vld [vmem:[%s4481_s1 + $0x38] sm:$0xff]  ;;  %v716_v54 = vadd.f32 %v588_v43, %v460_v42 }
  0x2a   : > { %v3116_v2 = vpop.eup %3115  ;;  %1047 = vmatpush.msra.mxu2 %v3114_v62  ;;  %3127 = vtanh.f32 %v712_v51  ;;  %v715_v49 = vadd.f32 %v587_v39, %v459_v38  ;;  %v590_v51 = vld [vmem:[%s3490_s30 + $0x38] sm:$0xff]  ;;  %v3644_v53 = vld [vmem:[%s3586_s19 + $0x8] sm:$0xff]  ;;  %v689_v56 = vld [vmem:[%s3490_s30 + $0x350] sm:$0xff]  ;;  %v717_v58 = vadd.f32 %v589_v47, %v461_v46 }
  0x2b   : > { %v3118_v7 = vpop.eup %3117  ;;  %1070 = vmatpush.msra.mxu3 %v3116_v2  ;;  %3129 = vtanh.f32 %v713_v55  ;;  %v561_v55 = vld [vmem:[%s4481_s1 + $0x350] sm:$0xff]  ;;  %v690_v60 = vld [vmem:[%s3490_s30 + $0x358] sm:$0xff]  ;;  %v718_v62 = vadd.f32 %v590_v51, %v462_v50  ;;  %v687_v0 = vld [vmem:[%s3490_s30 + $0x340] sm:$0xff] }
  0x2c   : > { %v3120_v11 = vpop.eup %3119  ;;  %1002 = vmatpush.msra.mxu0 %v3118_v7  ;;  %3131 = vtanh.f32 %v714_v59  ;;  %v562_v59 = vld [vmem:[%s4481_s1 + $0x358] sm:$0xff]  ;;  %v817_v2 = vadd.f32 %v689_v56, %v561_v55  ;;  %v688_v4 = vld [vmem:[%s3490_s30 + $0x348] sm:$0xff]  ;;  %v529_v7 = vld [vmem:[%s4481_s1 + $0x250] sm:$0xff] }
  0x2d   : > { %v3122_v15 = vpop.eup %3121  ;;  %1025 = vmatpush.msra.mxu1 %v3120_v11  ;;  %3133 = vtanh.f32 %v813_v63  ;;  %v559_v63 = vld [vmem:[%s4481_s1 + $0x340] sm:$0xff]  ;;  %v818_v6 = vadd.f32 %v690_v60, %v562_v59  ;;  %v530_v11 = vld [vmem:[%s4481_s1 + $0x258] sm:$0xff] }
  0x2e   : > { %v3124_v19 = vpop.eup %3123  ;;  %1048 = vmatpush.msra.mxu2 %v3122_v15  ;;  %3135 = vtanh.f32 %v814_v3  ;;  %v560_v3 = vld [vmem:[%s4481_s1 + $0x348] sm:$0xff]  ;;  %v815_v10 = vadd.f32 %v687_v0, %v559_v63  ;;  %v527_v15 = vld [vmem:[%s4481_s1 + $0x240] sm:$0xff] }
  0x2f   : > { %v3126_v24 = vpop.eup %3125  ;;  %1071 = vmatpush.msra.mxu3 %v3124_v19  ;;  %3137 = vtanh.f32 %v811_v8  ;;  %v657_v8 = vld [vmem:[%s3490_s30 + $0x250] sm:$0xff]  ;;  %v816_v14 = vadd.f32 %v688_v4, %v560_v3  ;;  %v528_v19 = vld [vmem:[%s4481_s1 + $0x248] sm:$0xff] }
  0x30   : > { %v3128_v28 = vpop.eup %3127  ;;  %1003 = vmatpush.msra.mxu0 %v3126_v24  ;;  %3139 = vtanh.f32 %v812_v12  ;;  %v658_v12 = vld [vmem:[%s3490_s30 + $0x258] sm:$0xff]  ;;  %v785_v18 = vadd.f32 %v657_v8, %v529_v7  ;;  %v495_v24 = vld [vmem:[%s4481_s1 + $0x140] sm:$0xff] }
  0x31   : > { %v3130_v32 = vpop.eup %3129  ;;  %1026 = vmatpush.msra.mxu1 %v3128_v28  ;;  %2977 = vmatmul.msk.f32.vlgmr.msra.gmra.mxu0 %vm981_vm0, %v3601_v20  ;;  %3141 = vtanh.f32 %v781_v16  ;;  %v655_v16 = vld [vmem:[%s3490_s30 + $0x240] sm:$0xff]  ;;  %v786_v23 = vadd.f32 %v658_v12, %v530_v11  ;;  %v496_v28 = vld [vmem:[%s4481_s1 + $0x148] sm:$0xff] }
  0x32   : > { %v3132_v36 = vpop.eup %3131  ;;  %1049 = vmatpush.msra.mxu2 %v3130_v32  ;;  %2979 = vmatmul.msk.f32.vlgmr.msra.gmra.mxu1 %vm981_vm0, %v3601_v20  ;;  %3143 = vtanh.f32 %v782_v21  ;;  %v656_v21 = vld [vmem:[%s3490_s30 + $0x248] sm:$0xff]  ;;  %v783_v27 = vadd.f32 %v655_v16, %v527_v15  ;;  %v497_v32 = vld [vmem:[%s4481_s1 + $0x150] sm:$0xff] }
  0x33   : > { %v3134_v40 = vpop.eup %3133  ;;  %1072 = vmatpush.msra.mxu3 %v3132_v36  ;;  %2981 = vmatmul.msk.f32.vlgmr.msra.gmra.mxu2 %vm981_vm0, %v3601_v20  ;;  %3145 = vtanh.f32 %v779_v25  ;;  %v623_v25 = vld [vmem:[%s3490_s30 + $0x140] sm:$0xff]  ;;  %v784_v31 = vadd.f32 %v656_v21, %v528_v19  ;;  %v498_v36 = vld [vmem:[%s4481_s1 + $0x158] sm:$0xff] }
  0x34   : > { %v3136_v44 = vpop.eup %3135  ;;  %2983 = vmatmul.msk.f32.vlgmr.msra.gmra.mxu3 %vm981_vm0, %v3601_v20  ;;  %1138 = vmatpush.msrb.mxu2 %v3134_v40  ;;  %3147 = vtanh.f32 %v780_v29  ;;  %v624_v29 = vld [vmem:[%s3490_s30 + $0x148] sm:$0xff]  ;;  %v751_v35 = vadd.f32 %v623_v25, %v495_v24  ;;  %v463_v40 = vld [vmem:[%s4481_s1 + $0x40] sm:$0xff] }
  0x35   : > { %v3138_v48 = vpop.eup %3137  ;;  %1161 = vmatpush.msrb.mxu3 %v3136_v44  ;;  %3149 = vtanh.f32 %v747_v33  ;;  %v625_v33 = vld [vmem:[%s3490_s30 + $0x150] sm:$0xff]  ;;  %v752_v39 = vadd.f32 %v624_v29, %v496_v28  ;;  %v464_v44 = vld [vmem:[%s4481_s1 + $0x48] sm:$0xff] }
  0x36   : > { %v3140_v52 = vpop.eup %3139  ;;  %1092 = vmatpush.msrb.mxu0 %v3138_v48  ;;  %3151 = vtanh.f32 %v748_v37  ;;  %v626_v37 = vld [vmem:[%s3490_s30 + $0x158] sm:$0xff]  ;;  %v753_v43 = vadd.f32 %v625_v33, %v497_v32  ;;  %v465_v48 = vld [vmem:[%s4481_s1 + $0x50] sm:$0xff] }
  0x37   : > { %v3142_v57 = vpop.eup %3141  ;;  %1115 = vmatpush.msrb.mxu1 %v3140_v52  ;;  %3153 = vtanh.f32 %v749_v41  ;;  %v591_v41 = vld [vmem:[%s3490_s30 + $0x40] sm:$0xff]  ;;  %v754_v47 = vadd.f32 %v626_v37, %v498_v36  ;;  %v466_v52 = vld [vmem:[%s4481_s1 + $0x58] sm:$0xff] }
  0x38   : > { %v3144_v61 = vpop.eup %3143  ;;  %1139 = vmatpush.msrb.mxu2 %v3142_v57  ;;  %3155 = vtanh.f32 %v750_v45  ;;  %v592_v45 = vld [vmem:[%s3490_s30 + $0x48] sm:$0xff]  ;;  %v719_v51 = vadd.f32 %v591_v41, %v463_v40  ;;  %v565_v57 = vld [vmem:[%s4481_s1 + $0x370] sm:$0xff] }
  0x39   : > { %v3146_v1 = vpop.eup %3145  ;;  %2978 = vmatmul.msk.f32.gmra.mxu0 %vm981_vm0, %v3644_v53  ;;  %1162 = vmatpush.msrb.mxu3 %v3144_v61  ;;  %3157 = vtanh.f32 %v715_v49  ;;  %v593_v49 = vld [vmem:[%s3490_s30 + $0x50] sm:$0xff]  ;;  %v720_v56 = vadd.f32 %v592_v45, %v464_v44  ;;  %v566_v61 = vld [vmem:[%s4481_s1 + $0x378] sm:$0xff] }
  0x3a   : > { %v3148_v5 = vpop.eup %3147  ;;  %2980 = vmatmul.msk.f32.gmra.mxu1 %vm981_vm0, %v3644_v53  ;;  %1093 = vmatpush.msrb.mxu0 %v3146_v1  ;;  %3159 = vtanh.f32 %v716_v54  ;;  %v594_v54 = vld [vmem:[%s3490_s30 + $0x58] sm:$0xff]  ;;  %v721_v60 = vadd.f32 %v593_v49, %v465_v48  ;;  %v563_v1 = vld [vmem:[%s4481_s1 + $0x360] sm:$0xff] }
  0x3b   : > { %v3150_v9 = vpop.eup %3149  ;;  %2982 = vmatmul.msk.f32.gmra.mxu2 %vm981_vm0, %v3644_v53  ;;  %1116 = vmatpush.msrb.mxu1 %v3148_v5  ;;  %3161 = vtanh.f32 %v717_v58  ;;  %v693_v58 = vld [vmem:[%s3490_s30 + $0x370] sm:$0xff]  ;;  %v722_v0 = vadd.f32 %v594_v54, %v466_v52  ;;  %v564_v5 = vld [vmem:[%s4481_s1 + $0x368] sm:$0xff] }
  0x3c   : > { %v3152_v13 = vpop.eup %3151  ;;  %2984 = vmatmul.msk.f32.gmra.mxu3 %vm981_vm0, %v3644_v53  ;;  %1094 = vmatpush.msrb.mxu0 %v3150_v9  ;;  %3163 = vtanh.f32 %v718_v62  ;;  %v694_v62 = vld [vmem:[%s3490_s30 + $0x378] sm:$0xff]  ;;  %v821_v4 = vadd.f32 %v693_v58, %v565_v57  ;;  %v533_v9 = vld [vmem:[%s4481_s1 + $0x270] sm:$0xff] }
  0x3d   : > { %v3154_v17 = vpop.eup %3153  ;;  %1117 = vmatpush.msrb.mxu1 %v3152_v13  ;;  %3165 = vtanh.f32 %v817_v2  ;;  %v691_v2 = vld [vmem:[%s3490_s30 + $0x360] sm:$0xff]  ;;  %v822_v8 = vadd.f32 %v694_v62, %v566_v61  ;;  %v534_v13 = vld [vmem:[%s4481_s1 + $0x278] sm:$0xff] }
  0x3e   : > { %v3156_v22 = vpop.eup %3155  ;;  %1140 = vmatpush.msrb.mxu2 %v3154_v17  ;;  %3167 = vtanh.f32 %v818_v6  ;;  %v692_v6 = vld [vmem:[%s3490_s30 + $0x368] sm:$0xff]  ;;  %v819_v12 = vadd.f32 %v691_v2, %v563_v1  ;;  %v531_v17 = vld [vmem:[%s4481_s1 + $0x260] sm:$0xff] }
  0x3f   : > { %v3158_v26 = vpop.eup %3157  ;;  %1163 = vmatpush.msrb.mxu3 %v3156_v22  ;;  %3169 = vtanh.f32 %v815_v10  ;;  %v661_v10 = vld [vmem:[%s3490_s30 + $0x270] sm:$0xff]  ;;  %v820_v16 = vadd.f32 %v692_v6, %v564_v5  ;;  %v532_v22 = vld [vmem:[%s4481_s1 + $0x268] sm:$0xff] }
  0x40   : > { %v3160_v30 = vpop.eup %3159  ;;  %1095 = vmatpush.msrb.mxu0 %v3158_v26  ;;  %3171 = vtanh.f32 %v816_v14  ;;  %v662_v14 = vld [vmem:[%s3490_s30 + $0x278] sm:$0xff]  ;;  %v789_v21 = vadd.f32 %v661_v10, %v533_v9  ;;  %v499_v26 = vld [vmem:[%s4481_s1 + $0x160] sm:$0xff] }
  0x41   : > { %v3162_v34 = vpop.eup %3161  ;;  %1118 = vmatpush.msrb.mxu1 %v3160_v30  ;;  %2985 = vmatmul.msk.f32.vlgmr.msrb.gmra.mxu0 %vm981_vm0, %v3601_v20  ;;  %3173 = vtanh.f32 %v785_v18  ;;  %v659_v18 = vld [vmem:[%s3490_s30 + $0x260] sm:$0xff]  ;;  %v790_v25 = vadd.f32 %v662_v14, %v534_v13  ;;  %v500_v30 = vld [vmem:[%s4481_s1 + $0x168] sm:$0xff] }
  0x42   : > { %v3164_v38 = vpop.eup %3163  ;;  %1141 = vmatpush.msrb.mxu2 %v3162_v34  ;;  %2987 = vmatmul.msk.f32.vlgmr.msrb.gmra.mxu1 %vm981_vm0, %v3601_v20  ;;  %3175 = vtanh.f32 %v786_v23  ;;  %v660_v23 = vld [vmem:[%s3490_s30 + $0x268] sm:$0xff]  ;;  %v787_v29 = vadd.f32 %v659_v18, %v531_v17  ;;  %v501_v34 = vld [vmem:[%s4481_s1 + $0x170] sm:$0xff] }
  0x43   : > { %v3166_v42 = vpop.eup %3165  ;;  %1164 = vmatpush.msrb.mxu3 %v3164_v38  ;;  %2989 = vmatmul.msk.f32.vlgmr.msrb.gmra.mxu2 %vm981_vm0, %v3601_v20  ;;  %3177 = vtanh.f32 %v783_v27  ;;  %v627_v27 = vld [vmem:[%s3490_s30 + $0x160] sm:$0xff]  ;;  %v788_v33 = vadd.f32 %v660_v23, %v532_v22  ;;  %v502_v38 = vld [vmem:[%s4481_s1 + $0x178] sm:$0xff] }
  0x44   : > { %v3168_v46 = vpop.eup %3167  ;;  %2991 = vmatmul.msk.f32.vlgmr.msrb.gmra.mxu3 %vm981_vm0, %v3601_v20  ;;  %1230 = vmatpush.msra.mxu2 %v3166_v42  ;;  %3179 = vtanh.f32 %v784_v31  ;;  %v628_v31 = vld [vmem:[%s3490_s30 + $0x168] sm:$0xff]  ;;  %v755_v37 = vadd.f32 %v627_v27, %v499_v26  ;;  %v467_v42 = vld [vmem:[%s4481_s1 + $0x60] sm:$0xff] }
  0x45   : > { %v3170_v50 = vpop.eup %3169  ;;  %1253 = vmatpush.msra.mxu3 %v3168_v46  ;;  %3181 = vtanh.f32 %v751_v35  ;;  %v629_v35 = vld [vmem:[%s3490_s30 + $0x170] sm:$0xff]  ;;  %v756_v41 = vadd.f32 %v628_v31, %v500_v30  ;;  %v468_v46 = vld [vmem:[%s4481_s1 + $0x68] sm:$0xff] }
  0x46   : > { %v3172_v55 = vpop.eup %3171  ;;  %1184 = vmatpush.msra.mxu0 %v3170_v50  ;;  %3183 = vtanh.f32 %v752_v39  ;;  %v630_v39 = vld [vmem:[%s3490_s30 + $0x178] sm:$0xff]  ;;  %v757_v45 = vadd.f32 %v629_v35, %v501_v34  ;;  %v469_v50 = vld [vmem:[%s4481_s1 + $0x70] sm:$0xff] }
  0x47   : > { %v3174_v59 = vpop.eup %3173  ;;  %1207 = vmatpush.msra.mxu1 %v3172_v55  ;;  %3185 = vtanh.f32 %v753_v43  ;;  %v595_v43 = vld [vmem:[%s3490_s30 + $0x60] sm:$0xff]  ;;  %v758_v49 = vadd.f32 %v630_v39, %v502_v38  ;;  %v470_v55 = vld [vmem:[%s4481_s1 + $0x78] sm:$0xff] }
  0x48   : > { %v3176_v63 = vpop.eup %3175  ;;  %1231 = vmatpush.msra.mxu2 %v3174_v59  ;;  %3187 = vtanh.f32 %v754_v47  ;;  %v596_v47 = vld [vmem:[%s3490_s30 + $0x68] sm:$0xff]  ;;  %v723_v54 = vadd.f32 %v595_v43, %v467_v42  ;;  %v569_v59 = vld [vmem:[%s4481_s1 + $0x390] sm:$0xff] }
  0x49   : > { %v3178_v3 = vpop.eup %3177  ;;  %2986 = vmatmul.msk.f32.gmra.mxu0 %vm981_vm0, %v3644_v53  ;;  %1254 = vmatpush.msra.mxu3 %v3176_v63  ;;  %3189 = vtanh.f32 %v719_v51  ;;  %v597_v51 = vld [vmem:[%s3490_s30 + $0x70] sm:$0xff]  ;;  %v724_v58 = vadd.f32 %v596_v47, %v468_v46  ;;  %v570_v63 = vld [vmem:[%s4481_s1 + $0x398] sm:$0xff] }
  0x4a   : > { %v3180_v7 = vpop.eup %3179  ;;  %2988 = vmatmul.msk.f32.gmra.mxu1 %vm981_vm0, %v3644_v53  ;;  %1185 = vmatpush.msra.mxu0 %v3178_v3  ;;  %3191 = vtanh.f32 %v720_v56  ;;  %v598_v56 = vld [vmem:[%s3490_s30 + $0x78] sm:$0xff]  ;;  %v725_v62 = vadd.f32 %v597_v51, %v469_v50  ;;  %v567_v3 = vld [vmem:[%s4481_s1 + $0x380] sm:$0xff] }
  0x4b   : > { %v3182_v11 = vpop.eup %3181  ;;  %2990 = vmatmul.msk.f32.gmra.mxu2 %vm981_vm0, %v3644_v53  ;;  %1208 = vmatpush.msra.mxu1 %v3180_v7  ;;  %3193 = vtanh.f32 %v721_v60  ;;  %v697_v60 = vld [vmem:[%s3490_s30 + $0x390] sm:$0xff]  ;;  %v726_v2 = vadd.f32 %v598_v56, %v470_v55  ;;  %v568_v7 = vld [vmem:[%s4481_s1 + $0x388] sm:$0xff] }
  0x4c   : > { %v3184_v15 = vpop.eup %3183  ;;  %2992 = vmatmul.msk.f32.gmra.mxu3 %vm981_vm0, %v3644_v53  ;;  %1186 = vmatpush.msra.mxu0 %v3182_v11  ;;  %3195 = vtanh.f32 %v722_v0  ;;  %v698_v0 = vld [vmem:[%s3490_s30 + $0x398] sm:$0xff]  ;;  %v825_v6 = vadd.f32 %v697_v60, %v569_v59  ;;  %v537_v11 = vld [vmem:[%s4481_s1 + $0x290] sm:$0xff] }
  0x4d   : > { %v3186_v19 = vpop.eup %3185  ;;  %1209 = vmatpush.msra.mxu1 %v3184_v15  ;;  %3197 = vtanh.f32 %v821_v4  ;;  %v695_v4 = vld [vmem:[%s3490_s30 + $0x380] sm:$0xff]  ;;  %v826_v10 = vadd.f32 %v698_v0, %v570_v63  ;;  %v538_v15 = vld [vmem:[%s4481_s1 + $0x298] sm:$0xff] }
  0x4e   : > { %v3188_v24 = vpop.eup %3187  ;;  %1232 = vmatpush.msra.mxu2 %v3186_v19  ;;  %3199 = vtanh.f32 %v822_v8  ;;  %v696_v8 = vld [vmem:[%s3490_s30 + $0x388] sm:$0xff]  ;;  %v823_v14 = vadd.f32 %v695_v4, %v567_v3  ;;  %v535_v19 = vld [vmem:[%s4481_s1 + $0x280] sm:$0xff] }
  0x4f   : > { %v3190_v28 = vpop.eup %3189  ;;  %1255 = vmatpush.msra.mxu3 %v3188_v24  ;;  %3201 = vtanh.f32 %v819_v12  ;;  %v665_v12 = vld [vmem:[%s3490_s30 + $0x290] sm:$0xff]  ;;  %v824_v18 = vadd.f32 %v696_v8, %v568_v7  ;;  %v536_v24 = vld [vmem:[%s4481_s1 + $0x288] sm:$0xff] }
  0x50   : > { %v3192_v32 = vpop.eup %3191  ;;  %1187 = vmatpush.msra.mxu0 %v3190_v28  ;;  %3203 = vtanh.f32 %v820_v16  ;;  %v666_v16 = vld [vmem:[%s3490_s30 + $0x298] sm:$0xff]  ;;  %v793_v23 = vadd.f32 %v665_v12, %v537_v11  ;;  %v503_v28 = vld [vmem:[%s4481_s1 + $0x180] sm:$0xff] }
  0x51   : > { %v3194_v36 = vpop.eup %3193  ;;  %1210 = vmatpush.msra.mxu1 %v3192_v32  ;;  %2993 = vmatmul.msk.f32.vlgmr.msra.gmra.mxu0 %vm981_vm0, %v3601_v20  ;;  %3205 = vtanh.f32 %v789_v21  ;;  %v663_v21 = vld [vmem:[%s3490_s30 + $0x280] sm:$0xff]  ;;  %v794_v27 = vadd.f32 %v666_v16, %v538_v15  ;;  %v504_v32 = vld [vmem:[%s4481_s1 + $0x188] sm:$0xff] }
  0x52   : > { %v3196_v40 = vpop.eup %3195  ;;  %1233 = vmatpush.msra.mxu2 %v3194_v36  ;;  %2995 = vmatmul.msk.f32.vlgmr.msra.gmra.mxu1 %vm981_vm0, %v3601_v20  ;;  %3207 = vtanh.f32 %v790_v25  ;;  %v664_v25 = vld [vmem:[%s3490_s30 + $0x288] sm:$0xff]  ;;  %v791_v31 = vadd.f32 %v663_v21, %v535_v19  ;;  %v505_v36 = vld [vmem:[%s4481_s1 + $0x190] sm:$0xff] }
  0x53   : > { %v3198_v44 = vpop.eup %3197  ;;  %1256 = vmatpush.msra.mxu3 %v3196_v40  ;;  %2997 = vmatmul.msk.f32.vlgmr.msra.gmra.mxu2 %vm981_vm0, %v3601_v20  ;;  %3209 = vtanh.f32 %v787_v29  ;;  %v631_v29 = vld [vmem:[%s3490_s30 + $0x180] sm:$0xff]  ;;  %v792_v35 = vadd.f32 %v664_v25, %v536_v24  ;;  %v506_v40 = vld [vmem:[%s4481_s1 + $0x198] sm:$0xff] }
  0x54   : > { %v3200_v48 = vpop.eup %3199  ;;  %2999 = vmatmul.msk.f32.vlgmr.msra.gmra.mxu3 %vm981_vm0, %v3601_v20  ;;  %1322 = vmatpush.msrb.mxu2 %v3198_v44  ;;  %3211 = vtanh.f32 %v788_v33  ;;  %v632_v33 = vld [vmem:[%s3490_s30 + $0x188] sm:$0xff]  ;;  %v759_v39 = vadd.f32 %v631_v29, %v503_v28  ;;  %v471_v44 = vld [vmem:[%s4481_s1 + $0x80] sm:$0xff] }
  0x55   : > { %v3202_v52 = vpop.eup %3201  ;;  %1345 = vmatpush.msrb.mxu3 %v3200_v48  ;;  %3213 = vtanh.f32 %v755_v37  ;;  %v633_v37 = vld [vmem:[%s3490_s30 + $0x190] sm:$0xff]  ;;  %v760_v43 = vadd.f32 %v632_v33, %v504_v32  ;;  %v472_v48 = vld [vmem:[%s4481_s1 + $0x88] sm:$0xff] }
  0x56   : > { %v3204_v57 = vpop.eup %3203  ;;  %1276 = vmatpush.msrb.mxu0 %v3202_v52  ;;  %3215 = vtanh.f32 %v756_v41  ;;  %v634_v41 = vld [vmem:[%s3490_s30 + $0x198] sm:$0xff]  ;;  %v761_v47 = vadd.f32 %v633_v37, %v505_v36  ;;  %v473_v52 = vld [vmem:[%s4481_s1 + $0x90] sm:$0xff] }
  0x57   : > { %v3206_v61 = vpop.eup %3205  ;;  %1299 = vmatpush.msrb.mxu1 %v3204_v57  ;;  %3217 = vtanh.f32 %v757_v45  ;;  %v599_v45 = vld [vmem:[%s3490_s30 + $0x80] sm:$0xff]  ;;  %v762_v51 = vadd.f32 %v634_v41, %v506_v40  ;;  %v474_v57 = vld [vmem:[%s4481_s1 + $0x98] sm:$0xff] }
  0x58   : > { %v3208_v1 = vpop.eup %3207  ;;  %1323 = vmatpush.msrb.mxu2 %v3206_v61  ;;  %3219 = vtanh.f32 %v758_v49  ;;  %v600_v49 = vld [vmem:[%s3490_s30 + $0x88] sm:$0xff]  ;;  %v727_v56 = vadd.f32 %v599_v45, %v471_v44  ;;  %v573_v61 = vld [vmem:[%s4481_s1 + $0x3b0] sm:$0xff] }
  0x59   : > { %v3210_v5 = vpop.eup %3209  ;;  %2994 = vmatmul.msk.f32.gmra.mxu0 %vm981_vm0, %v3644_v53  ;;  %1346 = vmatpush.msrb.mxu3 %v3208_v1  ;;  %3221 = vtanh.f32 %v723_v54  ;;  %v601_v54 = vld [vmem:[%s3490_s30 + $0x90] sm:$0xff]  ;;  %v728_v60 = vadd.f32 %v600_v49, %v472_v48  ;;  %v574_v1 = vld [vmem:[%s4481_s1 + $0x3b8] sm:$0xff] }
  0x5a   : > { %v3212_v9 = vpop.eup %3211  ;;  %2996 = vmatmul.msk.f32.gmra.mxu1 %vm981_vm0, %v3644_v53  ;;  %1277 = vmatpush.msrb.mxu0 %v3210_v5  ;;  %3223 = vtanh.f32 %v724_v58  ;;  %v602_v58 = vld [vmem:[%s3490_s30 + $0x98] sm:$0xff]  ;;  %v729_v0 = vadd.f32 %v601_v54, %v473_v52  ;;  %v571_v5 = vld [vmem:[%s4481_s1 + $0x3a0] sm:$0xff] }
  0x5b   : > { %v3214_v13 = vpop.eup %3213  ;;  %2998 = vmatmul.msk.f32.gmra.mxu2 %vm981_vm0, %v3644_v53  ;;  %1300 = vmatpush.msrb.mxu1 %v3212_v9  ;;  %3225 = vtanh.f32 %v725_v62  ;;  %v701_v62 = vld [vmem:[%s3490_s30 + $0x3b0] sm:$0xff]  ;;  %v730_v4 = vadd.f32 %v602_v58, %v474_v57  ;;  %v572_v9 = vld [vmem:[%s4481_s1 + $0x3a8] sm:$0xff] }
  0x5c   : > { %v3216_v17 = vpop.eup %3215  ;;  %3000 = vmatmul.msk.f32.gmra.mxu3 %vm981_vm0, %v3644_v53  ;;  %1278 = vmatpush.msrb.mxu0 %v3214_v13  ;;  %3227 = vtanh.f32 %v726_v2  ;;  %v702_v2 = vld [vmem:[%s3490_s30 + $0x3b8] sm:$0xff]  ;;  %v829_v8 = vadd.f32 %v701_v62, %v573_v61  ;;  %v541_v13 = vld [vmem:[%s4481_s1 + $0x2b0] sm:$0xff] }
  0x5d   : > { %v3218_v22 = vpop.eup %3217  ;;  %1301 = vmatpush.msrb.mxu1 %v3216_v17  ;;  %3229 = vtanh.f32 %v825_v6  ;;  %v699_v6 = vld [vmem:[%s3490_s30 + $0x3a0] sm:$0xff]  ;;  %v830_v12 = vadd.f32 %v702_v2, %v574_v1  ;;  %v542_v17 = vld [vmem:[%s4481_s1 + $0x2b8] sm:$0xff]  ;;  %v577_v62 = vld [vmem:[%s4481_s1 + $0x3d0] sm:$0xff] }
  0x5e   : > { %v3220_v26 = vpop.eup %3219  ;;  %1324 = vmatpush.msrb.mxu2 %v3218_v22  ;;  %3231 = vtanh.f32 %v826_v10  ;;  %v700_v10 = vld [vmem:[%s3490_s30 + $0x3a8] sm:$0xff]  ;;  %v827_v16 = vadd.f32 %v699_v6, %v571_v5  ;;  %v539_v22 = vld [vmem:[%s4481_s1 + $0x2a0] sm:$0xff]  ;;  %v578_v2 = vld [vmem:[%s4481_s1 + $0x3d8] sm:$0xff] }
  0x5f   : > { %v3222_v30 = vpop.eup %3221  ;;  %1347 = vmatpush.msrb.mxu3 %v3220_v26  ;;  %3233 = vtanh.f32 %v823_v14  ;;  %v669_v14 = vld [vmem:[%s3490_s30 + $0x2b0] sm:$0xff]  ;;  %v828_v21 = vadd.f32 %v700_v10, %v572_v9  ;;  %v540_v26 = vld [vmem:[%s4481_s1 + $0x2a8] sm:$0xff]  ;;  %v575_v6 = vld [vmem:[%s4481_s1 + $0x3c0] sm:$0xff] }
  0x60   : > { %v3224_v34 = vpop.eup %3223  ;;  %1279 = vmatpush.msrb.mxu0 %v3222_v30  ;;  %3235 = vtanh.f32 %v824_v18  ;;  %v670_v18 = vld [vmem:[%s3490_s30 + $0x2b8] sm:$0xff]  ;;  %v797_v25 = vadd.f32 %v669_v14, %v541_v13  ;;  %v507_v30 = vld [vmem:[%s4481_s1 + $0x1a0] sm:$0xff]  ;;  %v576_v10 = vld [vmem:[%s4481_s1 + $0x3c8] sm:$0xff] }
  0x61   : > { %v3226_v38 = vpop.eup %3225  ;;  %1302 = vmatpush.msrb.mxu1 %v3224_v34  ;;  %3001 = vmatmul.msk.f32.vlgmr.msrb.gmra.mxu0 %vm981_vm0, %v3601_v20  ;;  %3237 = vtanh.f32 %v793_v23  ;;  %v667_v23 = vld [vmem:[%s3490_s30 + $0x2a0] sm:$0xff]  ;;  %v798_v29 = vadd.f32 %v670_v18, %v542_v17  ;;  %v508_v34 = vld [vmem:[%s4481_s1 + $0x1a8] sm:$0xff]  ;;  %v545_v14 = vld [vmem:[%s4481_s1 + $0x2d0] sm:$0xff] }
  0x62   : > { %v3228_v42 = vpop.eup %3227  ;;  %1325 = vmatpush.msrb.mxu2 %v3226_v38  ;;  %3003 = vmatmul.msk.f32.vlgmr.msrb.gmra.mxu1 %vm981_vm0, %v3601_v20  ;;  %3239 = vtanh.f32 %v794_v27  ;;  %v668_v27 = vld [vmem:[%s3490_s30 + $0x2a8] sm:$0xff]  ;;  %v795_v33 = vadd.f32 %v667_v23, %v539_v22  ;;  %v509_v38 = vld [vmem:[%s4481_s1 + $0x1b0] sm:$0xff]  ;;  %v546_v18 = vld [vmem:[%s4481_s1 + $0x2d8] sm:$0xff] }
  0x63   : > { %v3230_v46 = vpop.eup %3229  ;;  %1348 = vmatpush.msrb.mxu3 %v3228_v42  ;;  %3005 = vmatmul.msk.f32.vlgmr.msrb.gmra.mxu2 %vm981_vm0, %v3601_v20  ;;  %3241 = vtanh.f32 %v791_v31  ;;  %v635_v31 = vld [vmem:[%s3490_s30 + $0x1a0] sm:$0xff]  ;;  %v796_v37 = vadd.f32 %v668_v27, %v540_v26  ;;  %v510_v42 = vld [vmem:[%s4481_s1 + $0x1b8] sm:$0xff]  ;;  %v544_v27 = vld [vmem:[%s4481_s1 + $0x2c8] sm:$0xff] }
  0x64   : > { %v3232_v50 = vpop.eup %3231  ;;  %3007 = vmatmul.msk.f32.vlgmr.msrb.gmra.mxu3 %vm981_vm0, %v3601_v20  ;;  %1414 = vmatpush.msra.mxu2 %v3230_v46  ;;  %3243 = vtanh.f32 %v792_v35  ;;  %v636_v35 = vld [vmem:[%s3490_s30 + $0x1a8] sm:$0xff]  ;;  %v763_v41 = vadd.f32 %v635_v31, %v507_v30  ;;  %v475_v46 = vld [vmem:[%s4481_s1 + $0xa0] sm:$0xff] }
  0x65   : > { %v3234_v55 = vpop.eup %3233  ;;  %1437 = vmatpush.msra.mxu3 %v3232_v50  ;;  %3245 = vtanh.f32 %v759_v39  ;;  %v637_v39 = vld [vmem:[%s3490_s30 + $0x1b0] sm:$0xff]  ;;  %v764_v45 = vadd.f32 %v636_v35, %v508_v34  ;;  %v476_v50 = vld [vmem:[%s4481_s1 + $0xa8] sm:$0xff]  ;;  %v543_v23 = vld [vmem:[%s4481_s1 + $0x2c0] sm:$0xff] }
  0x66   : > { %v3236_v59 = vpop.eup %3235  ;;  %1368 = vmatpush.msra.mxu0 %v3234_v55  ;;  %3247 = vtanh.f32 %v760_v43  ;;  %v638_v43 = vld [vmem:[%s3490_s30 + $0x1b8] sm:$0xff]  ;;  %v765_v49 = vadd.f32 %v637_v39, %v509_v38  ;;  %v477_v55 = vld [vmem:[%s4481_s1 + $0xb0] sm:$0xff]  ;;  %v511_v30 = vld [vmem:[%s4481_s1 + $0x1c0] sm:$0xff] }
  0x67   : > { %v3238_v63 = vpop.eup %3237  ;;  %1391 = vmatpush.msra.mxu1 %v3236_v59  ;;  %3249 = vtanh.f32 %v761_v47  ;;  %v603_v47 = vld [vmem:[%s3490_s30 + $0xa0] sm:$0xff]  ;;  %v766_v54 = vadd.f32 %v638_v43, %v510_v42  ;;  %v478_v59 = vld [vmem:[%s4481_s1 + $0xb8] sm:$0xff]  ;;  %v512_v34 = vld [vmem:[%s4481_s1 + $0x1c8] sm:$0xff] }
  0x68   : > { %v3240_v3 = vpop.eup %3239  ;;  %1415 = vmatpush.msra.mxu2 %v3238_v63  ;;  %3251 = vtanh.f32 %v762_v51  ;;  %v604_v51 = vld [vmem:[%s3490_s30 + $0xa8] sm:$0xff]  ;;  %v731_v58 = vadd.f32 %v603_v47, %v475_v46  ;;  %v705_v63 = vld [vmem:[%s3490_s30 + $0x3d0] sm:$0xff]  ;;  %v639_v31 = vld [vmem:[%s3490_s30 + $0x1c0] sm:$0xff] }
  0x69   : > { %v3242_v7 = vpop.eup %3241  ;;  %3002 = vmatmul.msk.f32.gmra.mxu0 %vm981_vm0, %v3644_v53  ;;  %1438 = vmatpush.msra.mxu3 %v3240_v3  ;;  %3253 = vtanh.f32 %v727_v56  ;;  %v605_v56 = vld [vmem:[%s3490_s30 + $0xb0] sm:$0xff]  ;;  %v732_v61 = vadd.f32 %v604_v51, %v476_v50  ;;  %v706_v3 = vld [vmem:[%s3490_s30 + $0x3d8] sm:$0xff]  ;;  %v833_v9 = vadd.f32 %v705_v63, %v577_v62  ;;  %v640_v35 = vld [vmem:[%s3490_s30 + $0x1c8] sm:$0xff]  ;;  %v767_v42 = vadd.f32 %v639_v31, %v511_v30 }
  0x6a   : > { %v3244_v11 = vpop.eup %3243  ;;  %3004 = vmatmul.msk.f32.gmra.mxu1 %vm981_vm0, %v3644_v53  ;;  %1369 = vmatpush.msra.mxu0 %v3242_v7  ;;  %3255 = vtanh.f32 %v728_v60  ;;  %v606_v60 = vld [vmem:[%s3490_s30 + $0xb8] sm:$0xff]  ;;  %v733_v1 = vadd.f32 %v605_v56, %v477_v55  ;;  %v703_v7 = vld [vmem:[%s3490_s30 + $0x3c0] sm:$0xff]  ;;  %v834_v13 = vadd.f32 %v706_v3, %v578_v2  ;;  %v513_v38 = vld [vmem:[%s4481_s1 + $0x1d0] sm:$0xff]  ;;  %v768_v46 = vadd.f32 %v640_v35, %v512_v34 }
  0x6b   : > { %v3246_v15 = vpop.eup %3245  ;;  %3006 = vmatmul.msk.f32.gmra.mxu2 %vm981_vm0, %v3644_v53  ;;  %1392 = vmatpush.msra.mxu1 %v3244_v11  ;;  %3257 = vtanh.f32 %v729_v0  ;;  %v734_v5 = vadd.f32 %v606_v60, %v478_v59  ;;  %v704_v11 = vld [vmem:[%s3490_s30 + $0x3c8] sm:$0xff]  ;;  %v831_v17 = vadd.f32 %v703_v7, %v575_v6  ;;  %v641_v39 = vld [vmem:[%s3490_s30 + $0x1d0] sm:$0xff]  ;;  %v514_v43 = vld [vmem:[%s4481_s1 + $0x1d8] sm:$0xff] }
  0x6c   : > { %v3248_v19 = vpop.eup %3247  ;;  %3008 = vmatmul.msk.f32.gmra.mxu3 %vm981_vm0, %v3644_v53  ;;  %1370 = vmatpush.msra.mxu0 %v3246_v15  ;;  %3259 = vtanh.f32 %v730_v4  ;;  %v673_v15 = vld [vmem:[%s3490_s30 + $0x2d0] sm:$0xff]  ;;  %v832_v22 = vadd.f32 %v704_v11, %v576_v10  ;;  %v479_v47 = vld [vmem:[%s4481_s1 + $0xc0] sm:$0xff]  ;;  %v769_v50 = vadd.f32 %v641_v39, %v513_v38  ;;  %v480_v51 = vld [vmem:[%s4481_s1 + $0xc8] sm:$0xff] }
  0x6d   : > { %v3250_v24 = vpop.eup %3249  ;;  %1393 = vmatpush.msra.mxu1 %v3248_v19  ;;  %3261 = vtanh.f32 %v829_v8  ;;  %v674_v19 = vld [vmem:[%s3490_s30 + $0x2d8] sm:$0xff]  ;;  %v801_v26 = vadd.f32 %v673_v15, %v545_v14  ;;  %v481_v56 = vld [vmem:[%s4481_s1 + $0xd0] sm:$0xff]  ;;  %v579_v7 = vld [vmem:[%s4481_s1 + $0x3e0] sm:$0xff] }
  0x6e   : > { %v3252_v28 = vpop.eup %3251  ;;  %1416 = vmatpush.msra.mxu2 %v3250_v24  ;;  %3263 = vtanh.f32 %v830_v12  ;;  %v671_v24 = vld [vmem:[%s3490_s30 + $0x2c0] sm:$0xff]  ;;  %v482_v60 = vld [vmem:[%s4481_s1 + $0xd8] sm:$0xff]  ;;  %v581_v63 = vld [vmem:[%s4481_s1 + $0x3f0] sm:$0xff] }
  0x6f   : > { %v3254_v32 = vpop.eup %3253  ;;  %1439 = vmatpush.msra.mxu3 %v3252_v28  ;;  %3265 = vtanh.f32 %v827_v16  ;;  %v672_v28 = vld [vmem:[%s3490_s30 + $0x2c8] sm:$0xff]  ;;  %v582_v3 = vld [vmem:[%s4481_s1 + $0x3f8] sm:$0xff] }
  0x70   : > { %v3256_v36 = vpop.eup %3255  ;;  %1371 = vmatpush.msra.mxu0 %v3254_v32  ;;  %3267 = vtanh.f32 %v828_v21  ;;  %v4062_v10 = vld [vmem:[%s3586_s19 + $0x8] sm:$0xff] }
  0x71   : > { %v3258_v40 = vpop.eup %3257  ;;  %1394 = vmatpush.msra.mxu1 %v3256_v36  ;;  %3009 = vmatmul.msk.f32.vlgmr.msra.gmra.mxu0 %vm981_vm0, %v3601_v20  ;;  %3269 = vtanh.f32 %v797_v25 }
  0x72   : > { %v3260_v44 = vpop.eup %3259  ;;  %1417 = vmatpush.msra.mxu2 %v3258_v40  ;;  %3011 = vmatmul.msk.f32.vlgmr.msra.gmra.mxu1 %vm981_vm0, %v3601_v20  ;;  %3271 = vtanh.f32 %v798_v29  ;;  %v802_v29 = vadd.f32 %v674_v19, %v546_v18 }
  0x73   : > { %v3262_v48 = vpop.eup %3261  ;;  %1440 = vmatpush.msra.mxu3 %v3260_v44  ;;  %3013 = vmatmul.msk.f32.vlgmr.msra.gmra.mxu2 %vm981_vm0, %v3601_v20  ;;  %3273 = vtanh.f32 %v795_v33  ;;  %v799_v33 = vadd.f32 %v671_v24, %v543_v23  ;;  %v642_v44 = vld [vmem:[%s3490_s30 + $0x1d8] sm:$0xff] }
  0x74   : > { %v3264_v52 = vpop.eup %3263  ;;  %3015 = vmatmul.msk.f32.vlgmr.msra.gmra.mxu3 %vm981_vm0, %v3601_v20  ;;  %1506 = vmatpush.msrb.mxu2 %v3262_v48  ;;  %3275 = vtanh.f32 %v796_v37  ;;  %v800_v37 = vadd.f32 %v672_v28, %v544_v27  ;;  %v607_v48 = vld [vmem:[%s3490_s30 + $0xc0] sm:$0xff]  ;;  %v770_v55 = vadd.f32 %v642_v44, %v514_v43 }
  0x75   : > { %v3266_v57 = vpop.eup %3265  ;;  %1529 = vmatpush.msrb.mxu3 %v3264_v52  ;;  %3277 = vtanh.f32 %v763_v41  ;;  %v4019_v41 = vld [vmem:[%s3586_s19] sm:$0xff]  ;;  %v608_v52 = vld [vmem:[%s3490_s30 + $0xc8] sm:$0xff]  ;;  %v735_v59 = vadd.f32 %v607_v48, %v479_v47  ;;  %s454_s19 = sld [smem:[#allocation3 + %s3462_s14]] }
  0x76   : > { %v3268_v20 = vpop.eup %3267  ;;  %1460 = vmatpush.msrb.mxu0 %v3266_v57  ;;  %3279 = vtanh.f32 %v764_v45  ;;  %v609_v57 = vld [vmem:[%s3490_s30 + $0xd0] sm:$0xff]  ;;  %v736_v62 = vadd.f32 %v608_v52, %v480_v51 }
  0x77   : > { %v3270_v0 = vpop.eup %3269  ;;  %1483 = vmatpush.msrb.mxu1 %v3268_v20  ;;  %3281 = vtanh.f32 %v765_v49  ;;  %v610_v20 = vld [vmem:[%s3490_s30 + $0xd8] sm:$0xff]  ;;  %v737_v2 = vadd.f32 %v609_v57, %v481_v56 }
  0x78   : > { %v3272_v4 = vpop.eup %3271  ;;  %1507 = vmatpush.msrb.mxu2 %v3270_v0  ;;  %3283 = vtanh.f32 %v766_v54  ;;  %v709_v0 = vld [vmem:[%s3490_s30 + $0x3f0] sm:$0xff]  ;;  %v738_v6 = vadd.f32 %v610_v20, %v482_v60 }
  0x79   : > { %v3274_v8 = vpop.eup %3273  ;;  %3010 = vmatmul.msk.f32.gmra.mxu0 %vm981_vm0, %v3644_v53  ;;  %1530 = vmatpush.msrb.mxu3 %v3272_v4  ;;  %3285 = vtanh.f32 %v731_v58  ;;  %v710_v4 = vld [vmem:[%s3490_s30 + $0x3f8] sm:$0xff]  ;;  %v837_v11 = vadd.f32 %v709_v0, %v581_v63 }
  0x7a   : > { %v3276_v12 = vpop.eup %3275  ;;  %3012 = vmatmul.msk.f32.gmra.mxu1 %vm981_vm0, %v3644_v53  ;;  %1461 = vmatpush.msrb.mxu0 %v3274_v8  ;;  %3287 = vtanh.f32 %v732_v61  ;;  %v707_v8 = vld [vmem:[%s3490_s30 + $0x3e0] sm:$0xff]  ;;  %v838_v15 = vadd.f32 %v710_v4, %v582_v3 }
  0x7b   : > { %v3278_v16 = vpop.eup %3277  ;;  %3014 = vmatmul.msk.f32.gmra.mxu2 %vm981_vm0, %v3644_v53  ;;  %1484 = vmatpush.msrb.mxu1 %v3276_v12  ;;  %3289 = vtanh.f32 %v733_v1  ;;  %v580_v12 = vld [vmem:[%s4481_s1 + $0x3e8] sm:$0xff]  ;;  %v835_v19 = vadd.f32 %v707_v8, %v579_v7  ;;  %s4334_s10 = sld [smem:[#allocation4 + %s454_s19]] }
  0x7c   : > { %v3280_v21 = vpop.eup %3279  ;;  %3016 = vmatmul.msk.f32.gmra.mxu3 %vm981_vm0, %v3644_v53  ;;  %1462 = vmatpush.msrb.mxu0 %v3278_v16  ;;  %3291 = vtanh.f32 %v734_v5  ;;  %v549_v16 = vld [vmem:[%s4481_s1 + $0x2f0] sm:$0xff] }
  0x7d   : > { %v3282_v25 = vpop.eup %3281  ;;  %1485 = vmatpush.msrb.mxu1 %v3280_v21  ;;  %3293 = vtanh.f32 %v833_v9  ;;  %v550_v21 = vld [vmem:[%s4481_s1 + $0x2f8] sm:$0xff] }
  0x7e   : > { %v3284_v53 = vpop.eup %3283  ;;  %1508 = vmatpush.msrb.mxu2 %v3282_v25  ;;  %3295 = vtanh.f32 %v834_v13  ;;  %v708_v13 = vld [vmem:[%s3490_s30 + $0x3e8] sm:$0xff]  ;;  %v547_v25 = vld [vmem:[%s4481_s1 + $0x2e0] sm:$0xff] }
  0x7f   : > { %v3286_v32 = vpop.eup %3285  ;;  %1531 = vmatpush.msrb.mxu3 %v3284_v53  ;;  %3297 = vtanh.f32 %v831_v17  ;;  %v677_v17 = vld [vmem:[%s3490_s30 + $0x2f0] sm:$0xff]  ;;  %v836_v24 = vadd.f32 %v708_v13, %v580_v12  ;;  %v548_v53 = vld [vmem:[%s4481_s1 + $0x2e8] sm:$0xff] }
  0x80   : > { %v3288_v36 = vpop.eup %3287  ;;  %1463 = vmatpush.msrb.mxu0 %v3286_v32  ;;  %3299 = vtanh.f32 %v832_v22  ;;  %v678_v22 = vld [vmem:[%s3490_s30 + $0x2f8] sm:$0xff]  ;;  %v805_v28 = vadd.f32 %v677_v17, %v549_v16  ;;  %v515_v32 = vld [vmem:[%s4481_s1 + $0x1e0] sm:$0xff] }
  0x81   : > { %v3290_v40 = vpop.eup %3289  ;;  %1486 = vmatpush.msrb.mxu1 %v3288_v36  ;;  %3017 = vmatmul.msk.f32.vlgmr.msrb.gmra.mxu0 %vm981_vm0, %v4019_v41  ;;  %3301 = vtanh.f32 %v801_v26  ;;  %v675_v26 = vld [vmem:[%s3490_s30 + $0x2e0] sm:$0xff]  ;;  %v806_v31 = vadd.f32 %v678_v22, %v550_v21  ;;  %v516_v36 = vld [vmem:[%s4481_s1 + $0x1e8] sm:$0xff] }
  0x82   : > { %v3292_v45 = vpop.eup %3291  ;;  %1509 = vmatpush.msrb.mxu2 %v3290_v40  ;;  %3019 = vmatmul.msk.f32.vlgmr.msrb.gmra.mxu1 %vm981_vm0, %v4019_v41  ;;  %3303 = vtanh.f32 %v802_v29  ;;  %v676_v29 = vld [vmem:[%s3490_s30 + $0x2e8] sm:$0xff]  ;;  %v803_v35 = vadd.f32 %v675_v26, %v547_v25  ;;  %v517_v40 = vld [vmem:[%s4481_s1 + $0x1f0] sm:$0xff] }
  0x83   : > { %v3294_v49 = vpop.eup %3293  ;;  %1532 = vmatpush.msrb.mxu3 %v3292_v45  ;;  %3021 = vmatmul.msk.f32.vlgmr.msrb.gmra.mxu2 %vm981_vm0, %v4019_v41  ;;  %3305 = vtanh.f32 %v799_v33  ;;  %v643_v33 = vld [vmem:[%s3490_s30 + $0x1e0] sm:$0xff]  ;;  %v804_v39 = vadd.f32 %v676_v29, %v548_v53  ;;  %v518_v45 = vld [vmem:[%s4481_s1 + $0x1f8] sm:$0xff] }
  0x84   : > { %v3296_v54 = vpop.eup %3295  ;;  %3023 = vmatmul.msk.f32.vlgmr.msrb.gmra.mxu3 %vm981_vm0, %v4019_v41  ;;  %1598 = vmatpush.msra.mxu2 %v3294_v49  ;;  %3307 = vtanh.f32 %v800_v37  ;;  %v644_v37 = vld [vmem:[%s3490_s30 + $0x1e8] sm:$0xff]  ;;  %v771_v44 = vadd.f32 %v643_v33, %v515_v32  ;;  %v483_v49 = vld [vmem:[%s4481_s1 + $0xe0] sm:$0xff] }
  0x85   : > { %v3298_v58 = vpop.eup %3297  ;;  %1621 = vmatpush.msra.mxu3 %v3296_v54  ;;  %3309 = vtanh.f32 %v767_v42  ;;  %v645_v42 = vld [vmem:[%s3490_s30 + $0x1f0] sm:$0xff]  ;;  %v772_v48 = vadd.f32 %v644_v37, %v516_v36  ;;  %v484_v54 = vld [vmem:[%s4481_s1 + $0xe8] sm:$0xff] }
  0x86   : > { %v3300_v61 = vpop.eup %3299  ;;  %1552 = vmatpush.msra.mxu0 %v3298_v58  ;;  %3311 = vtanh.f32 %v768_v46  ;;  %v646_v46 = vld [vmem:[%s3490_s30 + $0x1f8] sm:$0xff]  ;;  %v773_v52 = vadd.f32 %v645_v42, %v517_v40  ;;  %v485_v58 = vld [vmem:[%s4481_s1 + $0xf0] sm:$0xff] }
  0x87   : > { %v3302_v1 = vpop.eup %3301  ;;  %1575 = vmatpush.msra.mxu1 %v3300_v61  ;;  %3313 = vtanh.f32 %v769_v50  ;;  %v611_v50 = vld [vmem:[%s3490_s30 + $0xe0] sm:$0xff]  ;;  %v774_v57 = vadd.f32 %v646_v46, %v518_v45  ;;  %v486_v61 = vld [vmem:[%s4481_s1 + $0xf8] sm:$0xff] }
  0x88   : > { %v3304_v5 = vpop.eup %3303  ;;  %1599 = vmatpush.msra.mxu2 %v3302_v1  ;;  %3315 = vtanh.f32 %v770_v55  ;;  %v612_v55 = vld [vmem:[%s3490_s30 + $0xe8] sm:$0xff]  ;;  %v739_v20 = vadd.f32 %v611_v50, %v483_v49 }
  0x89   : > { %v3306_v9 = vpop.eup %3305  ;;  %3018 = vmatmul.msk.f32.gmra.mxu0 %vm981_vm0, %v4062_v10  ;;  %1622 = vmatpush.msra.mxu3 %v3304_v5  ;;  %3317 = vtanh.f32 %v735_v59  ;;  %v613_v59 = vld [vmem:[%s3490_s30 + $0xf0] sm:$0xff]  ;;  %v740_v0 = vadd.f32 %v612_v55, %v484_v54 }
  0x8a   : > { %v3308_v14 = vpop.eup %3307  ;;  %3020 = vmatmul.msk.f32.gmra.mxu1 %vm981_vm0, %v4062_v10  ;;  %1553 = vmatpush.msra.mxu0 %v3306_v9  ;;  %3319 = vtanh.f32 %v736_v62  ;;  %v614_v62 = vld [vmem:[%s3490_s30 + $0xf8] sm:$0xff]  ;;  %s431_s30 = sld [smem:[#allocation3 + %s3462_s14]] }
  0x8b   : > { %v3310_v18 = vpop.eup %3309  ;;  %3022 = vmatmul.msk.f32.gmra.mxu2 %vm981_vm0, %v4062_v10  ;;  %1576 = vmatpush.msra.mxu1 %v3308_v14  ;;  %3321 = vtanh.f32 %v737_v2  ;;  %v741_v2 = vadd.f32 %v613_v59, %v485_v58  ;;  %v742_v4 = vadd.f32 %v614_v62, %v486_v61 }
  0x8c   : > { %v3312_v23 = vpop.eup %3311  ;;  %3024 = vmatmul.msk.f32.gmra.mxu3 %vm981_vm0, %v4062_v10  ;;  %1554 = vmatpush.msra.mxu0 %v3310_v18  ;;  %3323 = vtanh.f32 %v738_v6 }
  0x8d   : > { %v3314_v27 = vpop.eup %3313  ;;  %1577 = vmatpush.msra.mxu1 %v3312_v23  ;;  %3325 = vtanh.f32 %v837_v11 }
  0x8e   : > { %v3316_v30 = vpop.eup %3315  ;;  %1600 = vmatpush.msra.mxu2 %v3314_v27  ;;  %3327 = vtanh.f32 %v838_v15 }
  0x8f   : > { %v3318_v34 = vpop.eup %3317  ;;  %1623 = vmatpush.msra.mxu3 %v3316_v30  ;;  %3329 = vtanh.f32 %v835_v19 }
  0x90   : > { %v3320_v38 = vpop.eup %3319  ;;  %1555 = vmatpush.msra.mxu0 %v3318_v34  ;;  %3331 = vtanh.f32 %v836_v24  ;;  %p432_p9 = scmp.lt.s32.totalorder %s431_s30, 1 }
  0x91   : > { %v3322_v43 = vpop.eup %3321  ;;  %1578 = vmatpush.msra.mxu1 %v3320_v38  ;;  %3025 = vmatmul.msk.f32.vlgmr.msra.gmra.mxu0 %vm981_vm0, %v4019_v41  ;;  %3333 = vtanh.f32 %v805_v28 }
  0x92   : > { %v3324_v47 = vpop.eup %3323  ;;  %1601 = vmatpush.msra.mxu2 %v3322_v43  ;;  %3027 = vmatmul.msk.f32.vlgmr.msra.gmra.mxu1 %vm981_vm0, %v4019_v41  ;;  %3335 = vtanh.f32 %v806_v31  ;;  %v4153_v16 = vpop.permute.xlu0 %978  ;;  %s4496_s30 = smov (!%p432_p9, %s431_s30), 1 }
  0x93   : > { %v3326_v51 = vpop.eup %3325  ;;  %1624 = vmatpush.msra.mxu3 %v3324_v47  ;;  %3029 = vmatmul.msk.f32.vlgmr.msra.gmra.mxu2 %vm981_vm0, %v4019_v41  ;;  %3337 = vtanh.f32 %v803_v35  ;;  %s2973_s27 = sshll.u32 %s4496_s30, 3  ;;  %s4408_s30 = scalar_lea.vmem %s4489_s9, %s4502_s11 }
  0x94   : > { %v3328_v56 = vpop.eup %3327  ;;  %3031 = vmatmul.msk.f32.vlgmr.msra.gmra.mxu3 %vm981_vm0, %v4019_v41  ;;  %1690 = vmatpush.msrb.mxu2 %v3326_v51  ;;  %3339 = vtanh.f32 %v804_v39  ;;  %s435_s17 = scalar_lea.vmem %s4485_s5, %s2973_s27 }
  0x95   : > { %v3330_v60 = vpop.eup %3329  ;;  %1713 = vmatpush.msrb.mxu3 %v3328_v56  ;;  %3341 = vtanh.f32 %v771_v44  ;;  %v4170_v36 = vld [vmem:[%s435_s17] sm:$0xff] }
  0x96   : > { %v3332_v63 = vpop.eup %3331  ;;  %1644 = vmatpush.msrb.mxu0 %v3330_v60  ;;  %3343 = vtanh.f32 %v772_v48 }
  0x97   : > { %v3334_v1 = vpop.eup %3333  ;;  %1667 = vmatpush.msrb.mxu1 %v3332_v63  ;;  %3345 = vtanh.f32 %v773_v52 }
  0x98   : > { %v3336_v3 = vpop.eup %3335  ;;  %1691 = vmatpush.msrb.mxu2 %v3334_v1  ;;  %3347 = vtanh.f32 %v774_v57 }
  0x99   : > { %v3338_v5 = vpop.eup %3337  ;;  %3026 = vmatmul.msk.f32.gmra.mxu0 %vm981_vm0, %v4062_v10  ;;  %1714 = vmatpush.msrb.mxu3 %v3336_v3  ;;  %3349 = vtanh.f32 %v739_v20 }
  0x9a   : > { %v3340_v6 = vpop.eup %3339  ;;  %3028 = vmatmul.msk.f32.gmra.mxu1 %vm981_vm0, %v4062_v10  ;;  %1645 = vmatpush.msrb.mxu0 %v3338_v5  ;;  %3351 = vtanh.f32 %v740_v0  ;;  %v4159_v19 = vpop.permute.xlu0 %973 }
  0x9b   : > { %v3342_v7 = vpop.eup %3341  ;;  %3030 = vmatmul.msk.f32.gmra.mxu2 %vm981_vm0, %v4062_v10  ;;  %1668 = vmatpush.msrb.mxu1 %v3340_v6  ;;  %3353 = vtanh.f32 %v741_v2 }
  0x9c   : > { %v3344_v8 = vpop.eup %3343  ;;  %3032 = vmatmul.msk.f32.gmra.mxu3 %vm981_vm0, %v4062_v10  ;;  %1646 = vmatpush.msrb.mxu0 %v3342_v7  ;;  %3355 = vtanh.f32 %v742_v4 }
  0x9d   : > { %v3346_v9 = vpop.eup %3345  ;;  %1669 = vmatpush.msrb.mxu1 %v3344_v8 }
  0x9e   : > { %v3348_v11 = vpop.eup %3347  ;;  %1692 = vmatpush.msrb.mxu2 %v3346_v9 }
  0x9f   : > { %v3350_v12 = vpop.eup %3349  ;;  %1715 = vmatpush.msrb.mxu3 %v3348_v11 }
  0xa0   : > { %v3352_v13 = vpop.eup %3351  ;;  %1647 = vmatpush.msrb.mxu0 %v3350_v12 }
  0xa1   : > { %v3354_v14 = vpop.eup %3353  ;;  %1670 = vmatpush.msrb.mxu1 %v3352_v13  ;;  %3033 = vmatmul.msk.f32.vlgmr.msrb.gmra.mxu0 %vm981_vm0, %v4019_v41 }
  0xa2   : > { %v3356_v15 = vpop.eup %3355  ;;  %1693 = vmatpush.msrb.mxu2 %v3354_v14  ;;  %3035 = vmatmul.msk.f32.vlgmr.msrb.gmra.mxu1 %vm981_vm0, %v4019_v41 }
  0xa3   : > { %1716 = vmatpush.msrb.mxu3 %v3356_v15  ;;  %3037 = vmatmul.msk.f32.vlgmr.msrb.gmra.mxu2 %vm981_vm0, %v4019_v41 }
  0xa4   : > { %3039 = vmatmul.msk.f32.vlgmr.msrb.gmra.mxu3 %vm981_vm0, %v4019_v41 }
  0xa9   : > { %3034 = vmatmul.msk.f32.gmra.mxu0 %vm981_vm0, %v4062_v10 }
  0xaa   : > { %3036 = vmatmul.msk.f32.gmra.mxu1 %vm981_vm0, %v4062_v10 }
  0xab   : > { %3038 = vmatmul.msk.f32.gmra.mxu2 %vm981_vm0, %v4062_v10 }
  0xac   : > { %3040 = vmatmul.msk.f32.gmra.mxu3 %vm981_vm0, %v4062_v10 }
  0xae   : > { %v1005_v17 = vpop.f32.mrf.mxu0 }
  0xaf   : > { %v1028_v18 = vpop.f32.mrf.mxu1  ;;  %v1006_v41 = vadd.f32 %v1005_v17, %v4159_v19 }
  0xb0   : > { %v1029_v23 = vadd.f32 %v1028_v18, %v4159_v19 }
  0xb1   : > { %v1724_v10 = vmax.f32 %v1006_v41, 0.0 }
  0xb2   : > { %v1725_v29 = vmax.f32 %v1029_v23, 0.0 }
  0xb6   : > { %v1051_v21 = vpop.f32.mrf.mxu2  ;;  %v1008_v22 = vpop.f32.mrf.mxu0 }
  0xb7   : > { %v1074_v24 = vpop.f32.mrf.mxu3  ;;  %v1009_v25 = vadd.f32 %v1008_v22, %v4153_v16  ;;  %v1031_v26 = vpop.f32.mrf.mxu1  ;;  %v1052_v32 = vadd.f32 %v1051_v21, %v4159_v19 }
  0xb8   : > { %v1032_v27 = vadd.f32 %v1031_v26, %v4153_v16  ;;  %v1075_v37 = vadd.f32 %v1074_v24, %v4159_v19 }
  0xb9   : > { %v1756_v28 = vmax.f32 %v1009_v25, 0.0  ;;  %v1726_v42 = vmax.f32 %v1052_v32, 0.0 }
  0xba   : > { %v1757_v53 = vmax.f32 %v1032_v27, 0.0  ;;  %v1727_v43 = vmax.f32 %v1075_v37, 0.0 }
  0xbb   : > { %1813 = vmatpush.msra.mxu0 %v1756_v28 }
  0xbc   : > { %1833 = vmatpush.msra.mxu1 %v1757_v53  ;;  %v1789_v53 = vld [vmem:[%s441_s24] sm:$0xff] }
  0xbd   : > { %1814 = vmatpush.msra.mxu0 %v1724_v10  ;;  %1792 = vperm.xlu1 %3100, %v1789_v53  }
  0xbe   : > { %v1054_v30 = vpop.f32.mrf.mxu2  ;;  %v1097_v31 = vpop.f32.mrf.mxu0  ;;  %1834 = vmatpush.msra.mxu1 %v1725_v29  ;;  %3041 = vmatmul.msk.f32.vlgmr.msra.gmra.mxu0 %vm1795_vm1, %v4170_v36 }
  0xbf   : > { %v1055_v33 = vadd.f32 %v1054_v30, %v4153_v16  ;;  %v1077_v34 = vpop.f32.mrf.mxu3  ;;  %v1120_v35 = vpop.f32.mrf.mxu1  ;;  %3042 = vmatmul.msk.f32.vlgmr.msra.gmra.mxu1 %vm1795_vm1, %v4170_v36  ;;  %v1098_v44 = vadd.f32 %v1097_v31, %v4159_v19 }
  0xc0   : > { %v1078_v38 = vadd.f32 %v1077_v34, %v4153_v16  ;;  %v1121_v45 = vadd.f32 %v1120_v35, %v4159_v19 }
  0xc1   : > { %v1758_v39 = vmax.f32 %v1055_v33, 0.0  ;;  %v1728_v52 = vmax.f32 %v1098_v44, 0.0  ;;  %v2471_v44 = vld [vmem:[%s447_s29] sm:$0xff] }
  0xc2   : > { %v1759_v40 = vmax.f32 %v1078_v38, 0.0  ;;  %v1729_v55 = vmax.f32 %v1121_v45, 0.0 }
  0xc3   : > { %1853 = vmatpush.msra.mxu2 %v1758_v39 }
  0xc4   : > { %1873 = vmatpush.msra.mxu3 %v1759_v40 }
  0xc5   : > { %1854 = vmatpush.msra.mxu2 %v1726_v42  ;;  %2474 = vperm.xlu1 %3100, %v2471_v44  }
  0xc6   : > { %1874 = vmatpush.msra.mxu3 %v1727_v43  ;;  %v1143_v46 = vpop.f32.mrf.mxu2  ;;  %v1100_v47 = vpop.f32.mrf.mxu0  ;;  %3043 = vmatmul.msk.f32.vlgmr.msra.gmra.mxu2 %vm1795_vm1, %v4170_v36 }
  0xc7   : > { %v1166_v48 = vpop.f32.mrf.mxu3  ;;  %v1101_v49 = vadd.f32 %v1100_v47, %v4153_v16  ;;  %v1123_v50 = vpop.f32.mrf.mxu1  ;;  %3044 = vmatmul.msk.f32.vlgmr.msra.gmra.mxu3 %vm1795_vm1, %v4170_v36  ;;  %v1144_v59 = vadd.f32 %v1143_v46, %v4159_v19 }
  0xc8   : > { %v1124_v51 = vadd.f32 %v1123_v50, %v4153_v16  ;;  %v1167_v62 = vadd.f32 %v1166_v48, %v4159_v19 }
  0xc9   : > { %v1760_v54 = vmax.f32 %v1101_v49, 0.0  ;;  %v1730_v2 = vmax.f32 %v1144_v59, 0.0 }
  0xca   : > { %v1761_v56 = vmax.f32 %v1124_v51, 0.0  ;;  %v1731_v3 = vmax.f32 %v1167_v62, 0.0 }
  0xcb   : > { %1893 = vmatpush.msrb.mxu0 %v1760_v54 }
  0xcc   : > { %1913 = vmatpush.msrb.mxu1 %v1761_v56 }
  0xcd   : > { %1894 = vmatpush.msrb.mxu0 %v1728_v52 }
  0xce   : > { %v1146_v57 = vpop.f32.mrf.mxu2  ;;  %v1189_v58 = vpop.f32.mrf.mxu0  ;;  %1914 = vmatpush.msrb.mxu1 %v1729_v55  ;;  %3045 = vmatmul.msk.f32.vlgmr.msrb.gmra.mxu0 %vm1795_vm1, %v4170_v36 }
  0xcf   : > { %v1147_v60 = vadd.f32 %v1146_v57, %v4153_v16  ;;  %v1169_v20 = vpop.f32.mrf.mxu3  ;;  %v1212_v61 = vpop.f32.mrf.mxu1  ;;  %3046 = vmatmul.msk.f32.vlgmr.msrb.gmra.mxu1 %vm1795_vm1, %v4170_v36  ;;  %v1190_v4 = vadd.f32 %v1189_v58, %v4159_v19 }
  0xd0   : > { %v1170_v63 = vadd.f32 %v1169_v20, %v4153_v16  ;;  %v1213_v5 = vadd.f32 %v1212_v61, %v4159_v19 }
  0xd1   : > { %v1762_v0 = vmax.f32 %v1147_v60, 0.0  ;;  %v1732_v13 = vmax.f32 %v1190_v4, 0.0 }
  0xd2   : > { %v1763_v1 = vmax.f32 %v1170_v63, 0.0  ;;  %v1733_v15 = vmax.f32 %v1213_v5, 0.0 }
  0xd3   : > { %1933 = vmatpush.msrb.mxu2 %v1762_v0 }
  0xd4   : > { %1953 = vmatpush.msrb.mxu3 %v1763_v1 }
  0xd5   : > { %1934 = vmatpush.msrb.mxu2 %v1730_v2 }
  0xd6   : > { %1954 = vmatpush.msrb.mxu3 %v1731_v3  ;;  %v1235_v6 = vpop.f32.mrf.mxu2  ;;  %v1192_v7 = vpop.f32.mrf.mxu0  ;;  %3047 = vmatmul.msk.f32.vlgmr.msrb.gmra.mxu2 %vm1795_vm1, %v4170_v36 }
  0xd7   : > { %v1258_v8 = vpop.f32.mrf.mxu3  ;;  %v1193_v9 = vadd.f32 %v1192_v7, %v4153_v16  ;;  %v1215_v11 = vpop.f32.mrf.mxu1  ;;  %3048 = vmatmul.msk.f32.vlgmr.msrb.gmra.mxu3 %vm1795_vm1, %v4170_v36  ;;  %v1236_v21 = vadd.f32 %v1235_v6, %v4159_v19 }
  0xd8   : > { %v1216_v12 = vadd.f32 %v1215_v11, %v4153_v16  ;;  %v1259_v25 = vadd.f32 %v1258_v8, %v4159_v19 }
  0xd9   : > { %v1764_v14 = vmax.f32 %v1193_v9, 0.0  ;;  %v1734_v10 = vmax.f32 %v1236_v21, 0.0 }
  0xda   : > { %v1765_v17 = vmax.f32 %v1216_v12, 0.0  ;;  %v1735_v29 = vmax.f32 %v1259_v25, 0.0 }
  0xdb   : > { %1973 = vmatpush.msra.mxu0 %v1764_v14 }
  0xdc   : > { %1993 = vmatpush.msra.mxu1 %v1765_v17 }
  0xdd   : > { %1974 = vmatpush.msra.mxu0 %v1732_v13 }
  0xde   : > { %v1238_v18 = vpop.f32.mrf.mxu2  ;;  %v1281_v41 = vpop.f32.mrf.mxu0  ;;  %1994 = vmatpush.msra.mxu1 %v1733_v15  ;;  %3049 = vmatmul.msk.f32.vlgmr.msra.gmra.mxu0 %vm1795_vm1, %v4170_v36 }
  0xdf   : > { %v1239_v22 = vadd.f32 %v1238_v18, %v4153_v16  ;;  %v1261_v23 = vpop.f32.mrf.mxu3  ;;  %v1304_v24 = vpop.f32.mrf.mxu1  ;;  %3050 = vmatmul.msk.f32.vlgmr.msra.gmra.mxu1 %vm1795_vm1, %v4170_v36  ;;  %v1282_v30 = vadd.f32 %v1281_v41, %v4159_v19 }
  0xe0   : > { %v1262_v26 = vadd.f32 %v1261_v23, %v4153_v16  ;;  %v1305_v31 = vadd.f32 %v1304_v24, %v4159_v19 }
  0xe1   : > { %v1766_v27 = vmax.f32 %v1239_v22, 0.0  ;;  %v1736_v39 = vmax.f32 %v1282_v30, 0.0 }
  0xe2   : > { %v1767_v28 = vmax.f32 %v1262_v26, 0.0  ;;  %v1737_v42 = vmax.f32 %v1305_v31, 0.0 }
  0xe3   : > { %2013 = vmatpush.msra.mxu2 %v1766_v27 }
  0xe4   : > { %2033 = vmatpush.msra.mxu3 %v1767_v28 }
  0xe5   : > { %2014 = vmatpush.msra.mxu2 %v1734_v10 }
  0xe6   : > { %2034 = vmatpush.msra.mxu3 %v1735_v29  ;;  %v1327_v32 = vpop.f32.mrf.mxu2  ;;  %v1284_v33 = vpop.f32.mrf.mxu0  ;;  %3051 = vmatmul.msk.f32.vlgmr.msra.gmra.mxu2 %vm1795_vm1, %v4170_v36 }
  0xe7   : > { %v1350_v34 = vpop.f32.mrf.mxu3  ;;  %v1285_v35 = vadd.f32 %v1284_v33, %v4153_v16  ;;  %v1307_v37 = vpop.f32.mrf.mxu1  ;;  %3052 = vmatmul.msk.f32.vlgmr.msra.gmra.mxu3 %vm1795_vm1, %v4170_v36  ;;  %v1328_v47 = vadd.f32 %v1327_v32, %v4159_v19 }
  0xe8   : > { %v1308_v38 = vadd.f32 %v1307_v37, %v4153_v16  ;;  %v1351_v51 = vadd.f32 %v1350_v34, %v4159_v19 }
  0xe9   : > { %v1768_v40 = vmax.f32 %v1285_v35, 0.0  ;;  %v1738_v56 = vmax.f32 %v1328_v47, 0.0 }
  0xea   : > { %v1769_v43 = vmax.f32 %v1308_v38, 0.0  ;;  %v1739_v57 = vmax.f32 %v1351_v51, 0.0 }
  0xeb   : > { %2053 = vmatpush.msrb.mxu0 %v1768_v40 }
  0xec   : > { %2073 = vmatpush.msrb.mxu1 %v1769_v43 }
  0xed   : > { %2054 = vmatpush.msrb.mxu0 %v1736_v39 }
  0xee   : > { %v1330_v45 = vpop.f32.mrf.mxu2  ;;  %v1373_v46 = vpop.f32.mrf.mxu0  ;;  %2074 = vmatpush.msrb.mxu1 %v1737_v42  ;;  %3053 = vmatmul.msk.f32.vlgmr.msrb.gmra.mxu0 %vm1795_vm1, %v4170_v36 }
  0xef   : > { %v1331_v48 = vadd.f32 %v1330_v45, %v4153_v16  ;;  %v1353_v49 = vpop.f32.mrf.mxu3  ;;  %v1396_v50 = vpop.f32.mrf.mxu1  ;;  %3054 = vmatmul.msk.f32.vlgmr.msrb.gmra.mxu1 %vm1795_vm1, %v4170_v36  ;;  %v1374_v60 = vadd.f32 %v1373_v46, %v4159_v19 }
  0xf0   : > { %v1354_v52 = vadd.f32 %v1353_v49, %v4153_v16  ;;  %v1397_v63 = vadd.f32 %v1396_v50, %v4159_v19 }
  0xf1   : > { %v1770_v54 = vmax.f32 %v1331_v48, 0.0  ;;  %v1740_v3 = vmax.f32 %v1374_v60, 0.0 }
  0xf2   : > { %v1771_v55 = vmax.f32 %v1354_v52, 0.0  ;;  %v1741_v4 = vmax.f32 %v1397_v63, 0.0 }
  0xf3   : > { %2093 = vmatpush.msrb.mxu2 %v1770_v54 }
  0xf4   : > { %2113 = vmatpush.msrb.mxu3 %v1771_v55 }
  0xf5   : > { %2094 = vmatpush.msrb.mxu2 %v1738_v56 }
  0xf6   : > { %2114 = vmatpush.msrb.mxu3 %v1739_v57  ;;  %v1419_v58 = vpop.f32.mrf.mxu2  ;;  %v1376_v59 = vpop.f32.mrf.mxu0  ;;  %3055 = vmatmul.msk.f32.vlgmr.msrb.gmra.mxu2 %vm1795_vm1, %v4170_v36 }
  0xf7   : > { %v1442_v20 = vpop.f32.mrf.mxu3  ;;  %v1377_v61 = vadd.f32 %v1376_v59, %v4153_v16  ;;  %v1399_v62 = vpop.f32.mrf.mxu1  ;;  %3056 = vmatmul.msk.f32.vlgmr.msrb.gmra.mxu3 %vm1795_vm1, %v4170_v36  ;;  %v1420_v7 = vadd.f32 %v1419_v58, %v4159_v19 }
  0xf8   : > { %v1400_v0 = vadd.f32 %v1399_v62, %v4153_v16  ;;  %v1443_v12 = vadd.f32 %v1442_v20, %v4159_v19 }
  0xf9   : > { %v1772_v1 = vmax.f32 %v1377_v61, 0.0  ;;  %v1742_v17 = vmax.f32 %v1420_v7, 0.0 }
  0xfa   : > { %v1773_v2 = vmax.f32 %v1400_v0, 0.0  ;;  %v1743_v18 = vmax.f32 %v1443_v12, 0.0 }
  0xfb   : > { %2133 = vmatpush.msra.mxu0 %v1772_v1 }
  0xfc   : > { %2153 = vmatpush.msra.mxu1 %v1773_v2 }
  0xfd   : > { %2134 = vmatpush.msra.mxu0 %v1740_v3 }
  0xfe   : > { %v1422_v5 = vpop.f32.mrf.mxu2  ;;  %2154 = vmatpush.msra.mxu1 %v1741_v4  ;;  %v1465_v6 = vpop.f32.mrf.mxu0  ;;  %3057 = vmatmul.msk.f32.vlgmr.msra.gmra.mxu0 %vm1795_vm1, %v4170_v36 }
  0xff   : > { %v1423_v8 = vadd.f32 %v1422_v5, %v4153_v16  ;;  %v1445_v9 = vpop.f32.mrf.mxu3  ;;  %v1488_v11 = vpop.f32.mrf.mxu1  ;;  %3058 = vmatmul.msk.f32.vlgmr.msra.gmra.mxu1 %vm1795_vm1, %v4170_v36  ;;  %v1466_v22 = vadd.f32 %v1465_v6, %v4159_v19 }
 0x100   : > { %v1446_v13 = vadd.f32 %v1445_v9, %v4153_v16  ;;  %v1489_v26 = vadd.f32 %v1488_v11, %v4159_v19 }
 0x101   : > { %v1774_v14 = vmax.f32 %v1423_v8, 0.0  ;;  %v1744_v53 = vmax.f32 %v1466_v22, 0.0 }
 0x102   : > { %v1775_v15 = vmax.f32 %v1446_v13, 0.0  ;;  %v1745_v29 = vmax.f32 %v1489_v26, 0.0 }
 0x103   : > { %2173 = vmatpush.msra.mxu2 %v1774_v14 }
 0x104   : > { %2193 = vmatpush.msra.mxu3 %v1775_v15 }
 0x105   : > { %2174 = vmatpush.msra.mxu2 %v1742_v17 }
 0x106   : > { %2194 = vmatpush.msra.mxu3 %v1743_v18  ;;  %v1511_v41 = vpop.f32.mrf.mxu2  ;;  %v1468_v21 = vpop.f32.mrf.mxu0  ;;  %3059 = vmatmul.msk.f32.vlgmr.msra.gmra.mxu2 %vm1795_vm1, %v4170_v36 }
 0x107   : > { %v1534_v23 = vpop.f32.mrf.mxu3  ;;  %v1469_v24 = vadd.f32 %v1468_v21, %v4153_v16  ;;  %v1491_v25 = vpop.f32.mrf.mxu1  ;;  %3060 = vmatmul.msk.f32.vlgmr.msra.gmra.mxu3 %vm1795_vm1, %v4170_v36  ;;  %v1512_v32 = vadd.f32 %v1511_v41, %v4159_v19 }
 0x108   : > { %v1492_v27 = vadd.f32 %v1491_v25, %v4153_v16  ;;  %v1535_v37 = vadd.f32 %v1534_v23, %v4159_v19 }
 0x109   : > { %v1776_v28 = vmax.f32 %v1469_v24, 0.0  ;;  %v1746_v42 = vmax.f32 %v1512_v32, 0.0 }
 0x10a   : > { %v1777_v10 = vmax.f32 %v1492_v27, 0.0  ;;  %v1747_v43 = vmax.f32 %v1535_v37, 0.0 }
 0x10b   : > { %2213 = vmatpush.msrb.mxu0 %v1776_v28 }
 0x10c   : > { %2233 = vmatpush.msrb.mxu1 %v1777_v10 }
 0x10d   : > { %2214 = vmatpush.msrb.mxu0 %v1744_v53 }
 0x10e   : > { %v1514_v30 = vpop.f32.mrf.mxu2  ;;  %2234 = vmatpush.msrb.mxu1 %v1745_v29  ;;  %v1557_v31 = vpop.f32.mrf.mxu0  ;;  %3061 = vmatmul.msk.f32.vlgmr.msrb.gmra.mxu0 %vm1795_vm1, %v4170_v36 }
 0x10f   : > { %v1515_v33 = vadd.f32 %v1514_v30, %v4153_v16  ;;  %v1537_v34 = vpop.f32.mrf.mxu3  ;;  %v1580_v35 = vpop.f32.mrf.mxu1  ;;  %3062 = vmatmul.msk.f32.vlgmr.msrb.gmra.mxu1 %vm1795_vm1, %v4170_v36  ;;  %v1558_v46 = vadd.f32 %v1557_v31, %v4159_v19 }
 0x110   : > { %v1538_v38 = vadd.f32 %v1537_v34, %v4153_v16  ;;  %v1581_v50 = vadd.f32 %v1580_v35, %v4159_v19 }
 0x111   : > { %v1778_v39 = vmax.f32 %v1515_v33, 0.0  ;;  %v1748_v55 = vmax.f32 %v1558_v46, 0.0 }
 0x112   : > { %v1779_v40 = vmax.f32 %v1538_v38, 0.0  ;;  %v1749_v56 = vmax.f32 %v1581_v50, 0.0 }
 0x113   : > { %2253 = vmatpush.msrb.mxu2 %v1778_v39 }
 0x114   : > { %2273 = vmatpush.msrb.mxu3 %v1779_v40 }
 0x115   : > { %2254 = vmatpush.msrb.mxu2 %v1746_v42 }
 0x116   : > { %2274 = vmatpush.msrb.mxu3 %v1747_v43  ;;  %v1603_v44 = vpop.f32.mrf.mxu2  ;;  %v1560_v45 = vpop.f32.mrf.mxu0  ;;  %3063 = vmatmul.msk.f32.vlgmr.msrb.gmra.mxu2 %vm1795_vm1, %v4170_v36 }
 0x117   : > { %v1626_v47 = vpop.f32.mrf.mxu3  ;;  %v1561_v48 = vadd.f32 %v1560_v45, %v4153_v16  ;;  %v1583_v49 = vpop.f32.mrf.mxu1  ;;  %3064 = vmatmul.msk.f32.vlgmr.msrb.gmra.mxu3 %vm1795_vm1, %v4170_v36  ;;  %v1604_v59 = vadd.f32 %v1603_v44, %v4159_v19 }
 0x118   : > { %v1584_v51 = vadd.f32 %v1583_v49, %v4153_v16  ;;  %v1627_v62 = vadd.f32 %v1626_v47, %v4159_v19 }
 0x119   : > { %v1780_v52 = vmax.f32 %v1561_v48, 0.0  ;;  %v1750_v2 = vmax.f32 %v1604_v59, 0.0 }
 0x11a   : > { %v1781_v54 = vmax.f32 %v1584_v51, 0.0  ;;  %v1751_v3 = vmax.f32 %v1627_v62, 0.0 }
 0x11b   : > { %2293 = vmatpush.msra.mxu0 %v1780_v52 }
 0x11c   : > { %2313 = vmatpush.msra.mxu1 %v1781_v54 }
 0x11d   : > { %2294 = vmatpush.msra.mxu0 %v1748_v55 }
 0x11e   : > { %v1606_v57 = vpop.f32.mrf.mxu2  ;;  %2314 = vmatpush.msra.mxu1 %v1749_v56  ;;  %v1649_v58 = vpop.f32.mrf.mxu0  ;;  %3065 = vmatmul.msk.f32.vlgmr.msra.gmra.mxu0 %vm1795_vm1, %v4170_v36 }
 0x11f   : > { %v1607_v60 = vadd.f32 %v1606_v57, %v4153_v16  ;;  %v1629_v20 = vpop.f32.mrf.mxu3  ;;  %v1672_v61 = vpop.f32.mrf.mxu1  ;;  %3066 = vmatmul.msk.f32.vlgmr.msra.gmra.mxu1 %vm1795_vm1, %v4170_v36  ;;  %v1650_v6 = vadd.f32 %v1649_v58, %v4159_v19 }
 0x120   : > { %v1630_v63 = vadd.f32 %v1629_v20, %v4153_v16  ;;  %v1673_v11 = vadd.f32 %v1672_v61, %v4159_v19 }
 0x121   : > { %v1782_v0 = vmax.f32 %v1607_v60, 0.0  ;;  %v1752_v15 = vmax.f32 %v1650_v6, 0.0 }
 0x122   : > { %v1783_v1 = vmax.f32 %v1630_v63, 0.0  ;;  %v1753_v17 = vmax.f32 %v1673_v11, 0.0 }
 0x123   : > { %2333 = vmatpush.msra.mxu2 %v1782_v0 }
 0x124   : > { %2353 = vmatpush.msra.mxu3 %v1783_v1 }
 0x125   : > { %2334 = vmatpush.msra.mxu2 %v1750_v2 }
 0x126   : > { %2354 = vmatpush.msra.mxu3 %v1751_v3  ;;  %v1695_v4 = vpop.f32.mrf.mxu2  ;;  %v1652_v5 = vpop.f32.mrf.mxu0  ;;  %3067 = vmatmul.msk.f32.vlgmr.msra.gmra.mxu2 %vm1795_vm1, %v4170_v36 }
 0x127   : > { %v1718_v7 = vpop.f32.mrf.mxu3  ;;  %v1653_v8 = vadd.f32 %v1652_v5, %v4153_v16  ;;  %v1675_v9 = vpop.f32.mrf.mxu1  ;;  %3068 = vmatmul.msk.f32.vlgmr.msra.gmra.mxu3 %vm1795_vm1, %v4170_v36  ;;  %v1696_v41 = vadd.f32 %v1695_v4, %v4159_v19 }
 0x128   : > { %v1676_v12 = vadd.f32 %v1675_v9, %v4153_v16  ;;  %v1719_v23 = vadd.f32 %v1718_v7, %v4159_v19 }
 0x129   : > { %v1784_v13 = vmax.f32 %v1653_v8, 0.0  ;;  %v1754_v27 = vmax.f32 %v1696_v41, 0.0 }
 0x12a   : > { %v1785_v14 = vmax.f32 %v1676_v12, 0.0  ;;  %v1755_v28 = vmax.f32 %v1719_v23, 0.0 }
 0x12b   : > { %2373 = vmatpush.msrb.mxu0 %v1784_v13 }
 0x12c   : > { %2393 = vmatpush.msrb.mxu1 %v1785_v14 }
 0x12d   : > { %2374 = vmatpush.msrb.mxu0 %v1752_v15 }
 0x12e   : > { %v1698_v18 = vpop.f32.mrf.mxu2  ;;  %2394 = vmatpush.msrb.mxu1 %v1753_v17  ;;  %3069 = vmatmul.msk.f32.vlgmr.msrb.gmra.mxu0 %vm1795_vm1, %v4170_v36 }
 0x12f   : > { %v1699_v21 = vadd.f32 %v1698_v18, %v4153_v16  ;;  %v1721_v22 = vpop.f32.mrf.mxu3  ;;  %3070 = vmatmul.msk.f32.vlgmr.msrb.gmra.mxu1 %vm1795_vm1, %v4170_v36  ;;  %v4314_v31 = vpop.permute.xlu1 %1792 }
 0x130   : > { %v1722_v24 = vadd.f32 %v1721_v22, %v4153_v16 }
 0x131   : > { %v1786_v25 = vmax.f32 %v1699_v21, 0.0 }
 0x132   : > { %v1787_v26 = vmax.f32 %v1722_v24, 0.0 }
 0x133   : > { %2413 = vmatpush.msrb.mxu2 %v1786_v25 }
 0x134   : > { %2433 = vmatpush.msrb.mxu3 %v1787_v26 }
 0x135   : > { %2414 = vmatpush.msrb.mxu2 %v1754_v27 }
 0x136   : > { %2434 = vmatpush.msrb.mxu3 %v1755_v28  ;;  %3071 = vmatmul.msk.f32.vlgmr.msrb.gmra.mxu2 %vm1795_vm1, %v4170_v36 }
 0x137   : > { %3072 = vmatmul.msk.f32.vlgmr.msrb.gmra.mxu3 %vm1795_vm1, %v4170_v36  ;;  %v4325_v48 = vpop.permute.xlu1 %2474 }
 0x13b   : > { %v1816_v10 = vpop.f32.mrf.mxu0 }
 0x13c   : > { %v1836_v53 = vpop.f32.mrf.mxu1  ;;  %v1817_v32 = vadd.f32 %v1816_v10, %v4314_v31 }
 0x13d   : > { %v1837_v33 = vadd.f32 %v1836_v53, %v4314_v31 }
 0x13e   : > { %v2439_v37 = vmax.f32 %v1817_v32, 0.0 }
 0x13f   : > { %v2440_v38 = vmax.f32 %v1837_v33, 0.0 }
 0x140   : > { %v2477_v52 = vmul.f32 %v4325_v48, %v2439_v37 }
 0x141   : > { %v2478_v54 = vmul.f32 %v4325_v48, %v2440_v38 }
 0x142   : > { %v2509_v20 = vrot.slane %v2477_v52, 4 }
 0x143   : > { %v2515_v61 = vrot.slane %v2478_v54, 4 }
 0x144   : > { %v2510_v2 = vadd.f32 %v2509_v20, %v2477_v52 }
 0x145   : > { %v2516_v3 = vadd.f32 %v2515_v61, %v2478_v54 }
 0x146   : > { %v2511_v11 = vrot.slane %v2510_v2, 2 }
 0x147   : > { %v2517_v12 = vrot.slane %v2516_v3, 2 }
 0x148   : > { %v2512_v41 = vadd.f32 %v2511_v11, %v2510_v2 }
 0x149   : > { %v1856_v16 = vpop.f32.mrf.mxu2  ;;  %v2518_v21 = vadd.f32 %v2517_v12, %v2516_v3 }
 0x14a   : > { %v1876_v30 = vpop.f32.mrf.mxu3  ;;  %v1857_v36 = vadd.f32 %v1856_v16, %v4314_v31  ;;  %v2513_v28 = vrot.slane %v2512_v41, 1 }
 0x14b   : > { %v1896_v19 = vpop.f32.mrf.mxu0  ;;  %v1877_v39 = vadd.f32 %v1876_v30, %v4314_v31  ;;  %v2519_v10 = vrot.slane %v2518_v21, 1 }
 0x14c   : > { %v1916_v29 = vpop.f32.mrf.mxu1  ;;  %v1897_v34 = vadd.f32 %v1896_v19, %v4314_v31  ;;  %v2441_v45 = vmax.f32 %v1857_v36, 0.0  ;;  %v4344_v36 = vstv %s4334_s10 }
 0x14d   : > { %v1917_v40 = vadd.f32 %v1916_v29, %v4314_v31  ;;  %v2442_v46 = vmax.f32 %v1877_v39, 0.0  ;;  %v2520_v39 = vadd.f32 %v2519_v10, %v2518_v21 }
 0x14e   : > { %v2443_v47 = vmax.f32 %v1897_v34, 0.0  ;;  %v2479_v55 = vmul.f32 %v4325_v48, %v2441_v45  ;;  %v2514_v45 = vadd.f32 %v2513_v28, %v2512_v41 }
 0x14f   : > { %v2444_v56 = vmax.f32 %v1917_v40, 0.0  ;;  %v2480_v59 = vmul.f32 %v4325_v48, %v2442_v46 }
 0x150   : > { %v2521_v62 = vrot.slane %v2479_v55, 4  ;;  %v2481_v1 = vmul.f32 %v4325_v48, %v2443_v47 }
 0x151   : > { %v2527_v0 = vrot.slane %v2480_v59, 4  ;;  %v2482_v8 = vmul.f32 %v4325_v48, %v2444_v56 }
 0x152   : > { %v2522_v5 = vadd.f32 %v2521_v62, %v2479_v55  ;;  %v2533_v9 = vrot.slane %v2481_v1, 4  ;;  %v2703_v62 = vadd.f32 %v4344_v36, %v2514_v45 }
 0x153   : > { %v2528_v7 = vadd.f32 %v2527_v0, %v2480_v59  ;;  %v2539_v27 = vrot.slane %v2482_v8, 4  ;;  %v2704_v59 = vadd.f32 %v4344_v36, %v2520_v39 }
 0x154   : > { %v2523_v14 = vrot.slane %v2522_v5, 2  ;;  %v2534_v18 = vadd.f32 %v2533_v9, %v2481_v1 }
 0x155   : > { %v2529_v17 = vrot.slane %v2528_v7, 2  ;;  %v2767_v11 = vrot.slane %v2704_v59, 7 }
 0x156   : > { %v2524_v23 = vadd.f32 %v2523_v14, %v2522_v5  ;;  %v2535_v34 = vrot.slane %v2534_v18, 2 }
 0x157   : > { %v2530_v26 = vadd.f32 %v2529_v17, %v2528_v7 }
 0x158   : > { %v2525_v29 = vrot.slane %v2524_v23, 1  ;;  %v2536_v54 = vadd.f32 %v2535_v34, %v2534_v18 }
 0x159   : > { %v1936_v50 = vpop.f32.mrf.mxu2  ;;  %v2531_v38 = vrot.slane %v2530_v26, 1 }
 0x15a   : > { %v1956_v57 = vpop.f32.mrf.mxu3  ;;  %v1937_v24 = vadd.f32 %v1936_v50, %v4314_v31  ;;  %v2526_v47 = vadd.f32 %v2525_v29, %v2524_v23  ;;  %v2537_v5 = vrot.slane %v2536_v54, 1 }
 0x15b   : > { %v1976_v35 = vpop.f32.mrf.mxu0  ;;  %v4339_v16 = vadd.f32 %v1956_v57, %v4314_v31  ;;  %v2532_v57 = vadd.f32 %v2531_v38, %v2530_v26 }
 0x15c   : > { %v1977_v42 = vadd.f32 %v1976_v35, %v4314_v31  ;;  %v1996_v43 = vpop.f32.mrf.mxu1  ;;  %v2705_v0 = vadd.f32 %v4344_v36, %v2526_v47 }
 0x15d   : > { %v1997_v44 = vadd.f32 %v1996_v43, %v4314_v31  ;;  %v2540_v43 = vadd.f32 %v2539_v27, %v2482_v8  ;;  %v2446_v50 = vmax.f32 %v4339_v16, 0.0  ;;  %v2706_v8 = vadd.f32 %v4344_v36, %v2532_v57 }
 0x15e   : > { %v2447_v49 = vmax.f32 %v1977_v42, 0.0  ;;  %v2768_v17 = vrot.slane %v2705_v0, 6 }
 0x15f   : > { %v2448_v51 = vmax.f32 %v1997_v44, 0.0  ;;  %v2445_v44 = vmax.f32 %v1937_v24, 0.0  ;;  %v2541_v61 = vrot.slane %v2540_v43, 2  ;;  %v2769_v26 = vrot.slane %v2706_v8, 5 }
 0x160   : > { %v2485_v58 = vmul.f32 %v4325_v48, %v2447_v49  ;;  %v2484_v29 = vmul.f32 %v4325_v48, %v2446_v50 }
 0x161   : > { %v2486_v60 = vmul.f32 %v4325_v48, %v2448_v51  ;;  %v2542_v14 = vadd.f32 %v2541_v61, %v2540_v43  ;;  %v2483_v41 = vmul.f32 %v4325_v48, %v2445_v44 }
 0x162   : > { %v2557_v63 = vrot.slane %v2485_v58, 4  ;;  %v2551_v50 = vrot.slane %v2484_v29, 4 }
 0x163   : > { %v2563_v4 = vrot.slane %v2486_v60, 4  ;;  %v2543_v23 = vrot.slane %v2542_v14, 1  ;;  %v2545_v28 = vrot.slane %v2483_v41, 4 }
 0x164   : > { %v2558_v6 = vadd.f32 %v2557_v63, %v2485_v58 }
 0x165   : > { %v2564_v13 = vadd.f32 %v2563_v4, %v2486_v60  ;;  %v2546_v34 = vadd.f32 %v2545_v28, %v2483_v41 }
 0x166   : > { %v2559_v15 = vrot.slane %v2558_v6, 2 }
 0x167   : > { %v2565_v22 = vrot.slane %v2564_v13, 2  ;;  %v2547_v45 = vrot.slane %v2546_v34, 2 }
 0x168   : > { %v2560_v25 = vadd.f32 %v2559_v15, %v2558_v6 }
 0x169   : > { %v2566_v53 = vadd.f32 %v2565_v22, %v2564_v13  ;;  %v2016_v19 = vpop.f32.mrf.mxu2  ;;  %v2538_v22 = vadd.f32 %v2537_v5, %v2536_v54 }
 0x16a   : > { %v2561_v30 = vrot.slane %v2560_v25, 1  ;;  %v2017_v32 = vadd.f32 %v2016_v19, %v4314_v31  ;;  %v2036_v33 = vpop.f32.mrf.mxu3 }
 0x16b   : > { %v2567_v35 = vrot.slane %v2566_v53, 1  ;;  %v2037_v37 = vadd.f32 %v2036_v33, %v4314_v31  ;;  %v2056_v42 = vpop.f32.mrf.mxu0  ;;  %v2707_v38 = vadd.f32 %v4344_v36, %v2538_v22 }
 0x16c   : > { %v2449_v40 = vmax.f32 %v2017_v32, 0.0  ;;  %v2076_v49 = vpop.f32.mrf.mxu1  ;;  %v2562_v51 = vadd.f32 %v2561_v30, %v2560_v25  ;;  %v2057_v58 = vadd.f32 %v2056_v42, %v4314_v31 }
 0x16d   : > { %v2450_v46 = vmax.f32 %v2037_v37, 0.0  ;;  %v2568_v55 = vadd.f32 %v2567_v35, %v2566_v53  ;;  %v2077_v20 = vadd.f32 %v2076_v49, %v4314_v31  ;;  %v2544_v53 = vadd.f32 %v2543_v23, %v2542_v14 }
 0x16e   : > { %v2487_v52 = vmul.f32 %v4325_v48, %v2449_v40  ;;  %v2451_v1 = vmax.f32 %v2057_v58, 0.0  ;;  %v4355_v2 = vadd.f32 %v4344_v36, %v2562_v51  ;;  %v2796_v51 = vsel %vm2795_vm2, %v2703_v62, %v2767_v11 }
 0x16f   : > { %v2488_v56 = vmul.f32 %v4325_v48, %v2450_v46  ;;  %v2452_v4 = vmax.f32 %v2077_v20, 0.0  ;;  %v4358_v6 = vadd.f32 %v4344_v36, %v2568_v55  ;;  %v2708_v47 = vadd.f32 %v4344_v36, %v2544_v53 }
 0x170   : > { %v2569_v60 = vrot.slane %v2487_v52, 4  ;;  %v2489_v9 = vmul.f32 %v4325_v48, %v2451_v1  ;;  %v2548_v55 = vadd.f32 %v2547_v45, %v2546_v34  ;;  %v2770_v58 = vrot.slane %v2707_v38, 4 }
 0x171   : > { %v2575_v63 = vrot.slane %v2488_v56, 4  ;;  %v2490_v13 = vmul.f32 %v4325_v48, %v2452_v4  ;;  %v2774_v16 = vrot.slane %v4358_v6, 7  ;;  %v2771_v1 = vrot.slane %v2708_v47, 3 }
 0x172   : > { %v2570_v3 = vadd.f32 %v2569_v60, %v2487_v52  ;;  %v2581_v18 = vrot.slane %v2489_v9, 4 }
 0x173   : > { %v2576_v7 = vadd.f32 %v2575_v63, %v2488_v56  ;;  %v2587_v24 = vrot.slane %v2490_v13, 4  ;;  %v2798_v56 = vsel %vm2797_vm3, %v2768_v17, %v2769_v26  ;;  %v2549_v63 = vrot.slane %v2548_v55, 1 }
 0x174   : > { %v2571_v12 = vrot.slane %v2570_v3, 2  ;;  %v2582_v27 = vadd.f32 %v2581_v18, %v2489_v9  ;;  %v2800_v14 = vsel %vm2799_vm4, %v2796_v51, %v2798_v56  ;;  %v2802_v18 = vsel %vm2801_vm5, %v2770_v58, %v2771_v1 }
 0x175   : > { %v2577_v15 = vrot.slane %v2576_v7, 2  ;;  %v2588_v19 = vadd.f32 %v2587_v24, %v2490_v13  ;;  %v2550_v9 = vadd.f32 %v2549_v63, %v2548_v55 }
 0x176   : > { %v2572_v21 = vadd.f32 %v2571_v12, %v2570_v3  ;;  %v2583_v32 = vrot.slane %v2582_v27, 2  ;;  %v2552_v3 = vadd.f32 %v2551_v50, %v2484_v29 }
 0x177   : > { %v2578_v25 = vadd.f32 %v2577_v15, %v2576_v7  ;;  %v2589_v37 = vrot.slane %v2588_v19, 2  ;;  %v2809_v7 = vsel %vm2795_vm2, %v4355_v2, %v2774_v16  ;;  %v2709_v28 = vadd.f32 %v4344_v36, %v2550_v9 }
 0x178   : > { %v2573_v10 = vrot.slane %v2572_v21, 1  ;;  %v2584_v43 = vadd.f32 %v2583_v32, %v2582_v27  ;;  %v2553_v11 = vrot.slane %v2552_v3, 2 }
 0x179   : > { %v2579_v30 = vrot.slane %v2578_v25, 1  ;;  %v2096_v33 = vpop.f32.mrf.mxu2  ;;  %v2590_v46 = vadd.f32 %v2589_v37, %v2588_v19 }
 0x17a   : > { %v2574_v35 = vadd.f32 %v2573_v10, %v2572_v21  ;;  %v2097_v39 = vadd.f32 %v2096_v33, %v4314_v31  ;;  %v2116_v40 = vpop.f32.mrf.mxu3  ;;  %v2585_v52 = vrot.slane %v2584_v43, 1  ;;  %v2554_v21 = vadd.f32 %v2553_v11, %v2552_v3 }
 0x17b   : > { %v2580_v42 = vadd.f32 %v2579_v30, %v2578_v25  ;;  %v2117_v44 = vadd.f32 %v2116_v40, %v4314_v31  ;;  %v2591_v57 = vrot.slane %v2590_v46, 1  ;;  %v2136_v6 = vpop.f32.mrf.mxu0 }
 0x17c   : > { %v2453_v49 = vmax.f32 %v2097_v39, 0.0  ;;  %v2713_v60 = vadd.f32 %v4344_v36, %v2574_v35  ;;  %v2586_v0 = vadd.f32 %v2585_v52, %v2584_v43  ;;  %v2156_v22 = vpop.f32.mrf.mxu1  ;;  %v2137_v24 = vadd.f32 %v2136_v6, %v4314_v31 }
 0x17d   : > { %v2454_v54 = vmax.f32 %v2117_v44, 0.0  ;;  %v2714_v20 = vadd.f32 %v4344_v36, %v2580_v42  ;;  %v2592_v4 = vadd.f32 %v2591_v57, %v2590_v46  ;;  %v2157_v25 = vadd.f32 %v2156_v22, %v4314_v31 }
 0x17e   : > { %v2491_v59 = vmul.f32 %v4325_v48, %v2453_v49  ;;  %v2775_v12 = vrot.slane %v2713_v60, 6  ;;  %v2715_v17 = vadd.f32 %v4344_v36, %v2586_v0  ;;  %v2555_v27 = vrot.slane %v2554_v21, 1 }
 0x17f   : > { %v2492_v61 = vmul.f32 %v4325_v48, %v2454_v54  ;;  %v2776_v13 = vrot.slane %v2714_v20, 5  ;;  %v2716_v23 = vadd.f32 %v4344_v36, %v2592_v4  ;;  %v2455_v19 = vmax.f32 %v2137_v24, 0.0 }
 0x180   : > { %v2593_v62 = vrot.slane %v2491_v59, 4  ;;  %v2456_v29 = vmax.f32 %v2157_v25, 0.0  ;;  %v2777_v16 = vrot.slane %v2715_v17, 4  ;;  %v2556_v32 = vadd.f32 %v2555_v27, %v2554_v21 }
 0x181   : > { %v2599_v5 = vrot.slane %v2492_v61, 4  ;;  %v2810_v10 = vsel %vm2797_vm3, %v2775_v12, %v2776_v13  ;;  %v2778_v33 = vrot.slane %v2716_v23, 3  ;;  %v2493_v35 = vmul.f32 %v4325_v48, %v2455_v19 }
 0x182   : > { %v2594_v8 = vadd.f32 %v2593_v62, %v2491_v59  ;;  %v2494_v37 = vmul.f32 %v4325_v48, %v2456_v29  ;;  %v2710_v40 = vadd.f32 %v4344_v36, %v2556_v32  ;;  %v2772_v42 = vrot.slane %v2709_v28, 2 }
 0x183   : > { %v2600_v15 = vadd.f32 %v2599_v5, %v2492_v61  ;;  %v2605_v56 = vrot.slane %v2493_v35, 4  ;;  %v2811_v0 = vsel %vm2799_vm4, %v2809_v7, %v2810_v10  ;;  %v2812_v1 = vsel %vm2801_vm5, %v2777_v16, %v2778_v33 }
 0x184   : > { %v2595_v41 = vrot.slane %v2594_v8, 2  ;;  %v2611_v46 = vrot.slane %v2494_v37, 4  ;;  %v2773_v51 = vrot.slane %v2710_v40, 1 }
 0x185   : > { %v2601_v2 = vrot.slane %v2600_v15, 2  ;;  %v2606_v11 = vadd.f32 %v2605_v56, %v2493_v35 }
 0x186   : > { %v2596_v26 = vadd.f32 %v2595_v41, %v2594_v8  ;;  %v2612_v57 = vadd.f32 %v2611_v46, %v2494_v37  ;;  %v2804_v60 = vsel %vm2803_vm6, %v2772_v42, %v2773_v51 }
 0x187   : > { %v2602_v53 = vadd.f32 %v2601_v2, %v2600_v15  ;;  %v2806_v3 = vsel %vm2805_vm7, %v2802_v18, %v2804_v60  ;;  %v2607_v24 = vrot.slane %v2606_v11, 2 }
 0x188   : > { %v2597_v30 = vrot.slane %v2596_v26, 1  ;;  %v2808_v4 = vsel %vm2807_vm8, %v2800_v14, %v2806_v3  ;;  %v2613_v12 = vrot.slane %v2612_v57, 2 }
 0x189   : > { %v2603_v34 = vrot.slane %v2602_v53, 1  ;;  %v2176_v38 = vpop.f32.mrf.mxu2  ;;  %2834 = vst [vmem:[%s4408_s30] sm:$0xff] %v2808_v4  ;;  %v2608_v16 = vadd.f32 %v2607_v24, %v2606_v11 }
 0x18a   : > { %v2598_v39 = vadd.f32 %v2597_v30, %v2596_v26  ;;  %v2177_v43 = vadd.f32 %v2176_v38, %v4314_v31  ;;  %v2196_v44 = vpop.f32.mrf.mxu3  ;;  %v2614_v25 = vadd.f32 %v2613_v12, %v2612_v57 }
 0x18b   : > { %v2604_v45 = vadd.f32 %v2603_v34, %v2602_v53  ;;  %v2197_v47 = vadd.f32 %v2196_v44, %v4314_v31  ;;  %v2216_v49 = vpop.f32.mrf.mxu0  ;;  %v2609_v44 = vrot.slane %v2608_v16, 1 }
 0x18c   : > { %v2717_v50 = vadd.f32 %v4344_v36, %v2598_v39  ;;  %v2457_v52 = vmax.f32 %v2177_v43, 0.0  ;;  %v2217_v54 = vadd.f32 %v2216_v49, %v4314_v31  ;;  %v2236_v63 = vpop.f32.mrf.mxu1  ;;  %v2615_v30 = vrot.slane %v2614_v25, 1 }
 0x18d   : > { %v2718_v55 = vadd.f32 %v4344_v36, %v2604_v45  ;;  %v2458_v58 = vmax.f32 %v2197_v47, 0.0  ;;  %v2237_v7 = vadd.f32 %v2236_v63, %v4314_v31 }
 0x18e   : > { %v2779_v59 = vrot.slane %v2717_v50, 2  ;;  %v2495_v20 = vmul.f32 %v4325_v48, %v2457_v52  ;;  %v2459_v61 = vmax.f32 %v2217_v54, 0.0  ;;  %v2616_v45 = vadd.f32 %v2615_v30, %v2614_v25 }
 0x18f   : > { %v2780_v62 = vrot.slane %v2718_v55, 1  ;;  %v2496_v6 = vmul.f32 %v4325_v48, %v2458_v58  ;;  %v2460_v14 = vmax.f32 %v2237_v7, 0.0  ;;  %v2610_v58 = vadd.f32 %v2609_v44, %v2608_v16 }
 0x190   : > { %v2617_v5 = vrot.slane %v2495_v20, 4  ;;  %v2497_v8 = vmul.f32 %v4325_v48, %v2459_v61 }
 0x191   : > { %v2813_v9 = vsel %vm2803_vm6, %v2779_v59, %v2780_v62  ;;  %v2623_v17 = vrot.slane %v2496_v6, 4  ;;  %v2498_v2 = vmul.f32 %v4325_v48, %v2460_v14  ;;  %v2720_v59 = vadd.f32 %v4344_v36, %v2616_v45 }
 0x192   : > { %v2814_v13 = vsel %vm2805_vm7, %v2812_v1, %v2813_v9  ;;  %v2618_v15 = vadd.f32 %v2617_v5, %v2495_v20  ;;  %v2629_v18 = vrot.slane %v2497_v8, 4 }
 0x193   : > { %v2815_v41 = vsel %vm2807_vm8, %v2811_v0, %v2814_v13  ;;  %v2624_v21 = vadd.f32 %v2623_v17, %v2496_v6  ;;  %v2635_v28 = vrot.slane %v2498_v2, 4  ;;  %v2719_v6 = vadd.f32 %v4344_v36, %v2610_v58 }
 0x194   : > { %2835 = vst [vmem:[%s4408_s30 + $0x8] sm:$0xff] %v2815_v41  ;;  %v2630_v22 = vadd.f32 %v2629_v18, %v2497_v8  ;;  %v2619_v23 = vrot.slane %v2618_v15, 2  ;;  %v2781_v8 = vrot.slane %v2720_v59, 7 }
 0x195   : > { %v2625_v26 = vrot.slane %v2624_v21, 2  ;;  %v2636_v19 = vadd.f32 %v2635_v28, %v2498_v2 }
 0x196   : > { %v2631_v27 = vrot.slane %v2630_v22, 2  ;;  %v2620_v10 = vadd.f32 %v2619_v23, %v2618_v15 }
 0x197   : > { %v2626_v53 = vadd.f32 %v2625_v26, %v2624_v21  ;;  %v2637_v35 = vrot.slane %v2636_v19, 2 }
 0x198   : > { %v2632_v34 = vadd.f32 %v2631_v27, %v2630_v22  ;;  %v2621_v39 = vrot.slane %v2620_v10, 1  ;;  %v2816_v22 = vsel %vm2795_vm2, %v2719_v6, %v2781_v8 }
 0x199   : > { %v2256_v29 = vpop.f32.mrf.mxu2  ;;  %v2627_v40 = vrot.slane %v2626_v53, 1  ;;  %v2638_v42 = vadd.f32 %v2637_v35, %v2636_v19 }
 0x19a   : > { %v2257_v32 = vadd.f32 %v2256_v29, %v4314_v31  ;;  %v2276_v33 = vpop.f32.mrf.mxu3  ;;  %v2633_v47 = vrot.slane %v2632_v34, 1  ;;  %v2622_v52 = vadd.f32 %v2621_v39, %v2620_v10 }
 0x19b   : > { %v2277_v37 = vadd.f32 %v2276_v33, %v4314_v31  ;;  %v2639_v49 = vrot.slane %v2638_v42, 1  ;;  %v2628_v54 = vadd.f32 %v2627_v40, %v2626_v53  ;;  %v2296_v56 = vpop.f32.mrf.mxu0 }
 0x19c   : > { %v2461_v38 = vmax.f32 %v2257_v32, 0.0  ;;  %v2316_v57 = vpop.f32.mrf.mxu1  ;;  %v2634_v61 = vadd.f32 %v2633_v47, %v2632_v34  ;;  %v2297_v62 = vadd.f32 %v2296_v56, %v4314_v31  ;;  %v2721_v3 = vadd.f32 %v4344_v36, %v2622_v52 }
 0x19d   : > { %v2462_v43 = vmax.f32 %v2277_v37, 0.0  ;;  %v2317_v20 = vadd.f32 %v2316_v57, %v4314_v31  ;;  %v2640_v63 = vadd.f32 %v2639_v49, %v2638_v42  ;;  %v2722_v4 = vadd.f32 %v4344_v36, %v2628_v54 }
 0x19e   : > { %v2499_v46 = vmul.f32 %v4325_v48, %v2461_v38  ;;  %v2723_v12 = vadd.f32 %v4344_v36, %v2634_v61  ;;  %v2463_v17 = vmax.f32 %v2297_v62, 0.0  ;;  %v2782_v18 = vrot.slane %v2721_v3, 6 }
 0x19f   : > { %v2500_v50 = vmul.f32 %v4325_v48, %v2462_v43  ;;  %v2464_v11 = vmax.f32 %v2317_v20, 0.0  ;;  %v2724_v7 = vadd.f32 %v4344_v36, %v2640_v63  ;;  %v2783_v41 = vrot.slane %v2722_v4, 5 }
 0x1a0   : > { %v2641_v51 = vrot.slane %v2499_v46, 4  ;;  %v2784_v26 = vrot.slane %v2723_v12, 4  ;;  %v2501_v29 = vmul.f32 %v4325_v48, %v2463_v17 }
 0x1a1   : > { %v2647_v55 = vrot.slane %v2500_v50, 4  ;;  %v2502_v2 = vmul.f32 %v4325_v48, %v2464_v11  ;;  %v2785_v27 = vrot.slane %v2724_v7, 3  ;;  %v2817_v33 = vsel %vm2797_vm3, %v2782_v18, %v2783_v41 }
 0x1a2   : > { %v2642_v60 = vadd.f32 %v2641_v51, %v2499_v46  ;;  %v2818_v47 = vsel %vm2799_vm4, %v2816_v22, %v2817_v33  ;;  %v2653_v56 = vrot.slane %v2501_v29, 4 }
 0x1a3   : > { %v2648_v0 = vadd.f32 %v2647_v55, %v2500_v50  ;;  %v2659_v39 = vrot.slane %v2502_v2, 4  ;;  %v2819_v43 = vsel %vm2801_vm5, %v2784_v26, %v2785_v27 }
 0x1a4   : > { %v2643_v1 = vrot.slane %v2642_v60, 2 }
 0x1a5   : > { %v2649_v5 = vrot.slane %v2648_v0, 2  ;;  %v2660_v57 = vadd.f32 %v2659_v39, %v2502_v2 }
 0x1a6   : > { %v2644_v9 = vadd.f32 %v2643_v1, %v2642_v60  ;;  %v2654_v1 = vadd.f32 %v2653_v56, %v2501_v29 }
 0x1a7   : > { %v2650_v13 = vadd.f32 %v2649_v5, %v2648_v0  ;;  %v2661_v62 = vrot.slane %v2660_v57, 2 }
 0x1a8   : > { %v2645_v15 = vrot.slane %v2644_v9, 1 }
 0x1a9   : > { %v2651_v14 = vrot.slane %v2650_v13, 1  ;;  %v2336_v21 = vpop.f32.mrf.mxu2  ;;  %v2662_v7 = vadd.f32 %v2661_v62, %v2660_v57 }
 0x1aa   : > { %v2646_v23 = vadd.f32 %v2645_v15, %v2644_v9  ;;  %v2337_v24 = vadd.f32 %v2336_v21, %v4314_v31  ;;  %v2356_v25 = vpop.f32.mrf.mxu3  ;;  %v2655_v9 = vrot.slane %v2654_v1, 2 }
 0x1ab   : > { %v2652_v28 = vadd.f32 %v2651_v14, %v2650_v13  ;;  %v2357_v10 = vadd.f32 %v2356_v25, %v4314_v31  ;;  %v2376_v53 = vpop.f32.mrf.mxu0  ;;  %v2663_v2 = vrot.slane %v2662_v7, 1 }
 0x1ac   : > { %v2725_v19 = vadd.f32 %v4344_v36, %v2646_v23  ;;  %v2465_v16 = vmax.f32 %v2337_v24, 0.0  ;;  %v2377_v30 = vadd.f32 %v2376_v53, %v4314_v31  ;;  %v2396_v32 = vpop.f32.mrf.mxu1  ;;  %v2656_v22 = vadd.f32 %v2655_v9, %v2654_v1 }
 0x1ad   : > { %v2726_v34 = vadd.f32 %v4344_v36, %v2652_v28  ;;  %v2466_v35 = vmax.f32 %v2357_v10, 0.0  ;;  %v2397_v37 = vadd.f32 %v2396_v32, %v4314_v31 }
 0x1ae   : > { %v2786_v38 = vrot.slane %v2725_v19, 2  ;;  %v2503_v40 = vmul.f32 %v4325_v48, %v2465_v16  ;;  %v2467_v42 = vmax.f32 %v2377_v30, 0.0  ;;  %v2657_v19 = vrot.slane %v2656_v22, 1 }
 0x1af   : > { %v2787_v44 = vrot.slane %v2726_v34, 1  ;;  %v2504_v45 = vmul.f32 %v4325_v48, %v2466_v35  ;;  %v2468_v46 = vmax.f32 %v2397_v37, 0.0  ;;  %v2664_v16 = vadd.f32 %v2663_v2, %v2662_v7 }
 0x1b0   : > { %v2665_v49 = vrot.slane %v2503_v40, 4  ;;  %v2505_v50 = vmul.f32 %v4325_v48, %v2467_v42 }
 0x1b1   : > { %v2820_v51 = vsel %vm2803_vm6, %v2786_v38, %v2787_v44  ;;  %v2671_v52 = vrot.slane %v2504_v45, 4  ;;  %v2506_v54 = vmul.f32 %v4325_v48, %v2468_v46  ;;  %v2658_v38 = vadd.f32 %v2657_v19, %v2656_v22 }
 0x1b2   : > { %v2821_v55 = vsel %vm2805_vm7, %v2819_v43, %v2820_v51  ;;  %v2677_v58 = vrot.slane %v2505_v50, 4  ;;  %v2666_v60 = vadd.f32 %v2665_v49, %v2503_v40  ;;  %v2728_v40 = vadd.f32 %v4344_v36, %v2664_v16 }
 0x1b3   : > { %v2822_v59 = vsel %vm2807_vm8, %v2818_v47, %v2821_v55  ;;  %v2672_v20 = vadd.f32 %v2671_v52, %v2504_v45  ;;  %v2683_v61 = vrot.slane %v2506_v54, 4  ;;  %v2727_v49 = vadd.f32 %v4344_v36, %v2658_v38 }
 0x1b4   : > { %2836 = vst [vmem:[%s4408_s30 + $0x10] sm:$0xff] %v2822_v59  ;;  %v2678_v63 = vadd.f32 %v2677_v58, %v2505_v50  ;;  %v2667_v3 = vrot.slane %v2666_v60, 2  ;;  %v2788_v51 = vrot.slane %v2728_v40, 7 }
 0x1b5   : > { %v2684_v0 = vadd.f32 %v2683_v61, %v2506_v54  ;;  %v2673_v4 = vrot.slane %v2672_v20, 2 }
 0x1b6   : > { %v2679_v5 = vrot.slane %v2678_v63, 2  ;;  %v2668_v13 = vadd.f32 %v2667_v3, %v2666_v60 }
 0x1b7   : > { %v2685_v6 = vrot.slane %v2684_v0, 2  ;;  %v2674_v15 = vadd.f32 %v2673_v4, %v2672_v20  ;;  %v2823_v20 = vsel %vm2795_vm2, %v2727_v49, %v2788_v51 }
 0x1b8   : > { %v2680_v41 = vadd.f32 %v2679_v5, %v2678_v63  ;;  %v2669_v24 = vrot.slane %v2668_v13, 1 }
 0x1b9   : > { %v2416_v8 = vpop.f32.mrf.mxu2  ;;  %v2686_v14 = vadd.f32 %v2685_v6, %v2684_v0  ;;  %v2675_v25 = vrot.slane %v2674_v15, 1 }
 0x1ba   : > { %v2417_v11 = vadd.f32 %v2416_v8, %v4314_v31  ;;  %v2436_v12 = vpop.f32.mrf.mxu3  ;;  %v2681_v28 = vrot.slane %v2680_v41, 1 }
 0x1bb   : > { %v2437_v17 = vadd.f32 %v2436_v12, %v4314_v31  ;;  %v2687_v10 = vrot.slane %v2686_v14, 1  ;;  %v2670_v31 = vadd.f32 %v2669_v24, %v2668_v13  ;;  %v2676_v30 = vadd.f32 %v2675_v25, %v2674_v15 }
 0x1bc   : > { %v2469_v18 = vmax.f32 %v2417_v11, 0.0  ;;  %v2682_v34 = vadd.f32 %v2681_v28, %v2680_v41 }
 0x1bd   : > { %v2470_v21 = vmax.f32 %v2437_v17, 0.0  ;;  %v2688_v35 = vadd.f32 %v2687_v10, %v2686_v14  ;;  %v2730_v42 = vadd.f32 %v4344_v36, %v2676_v30 }
 0x1be   : > { %v2507_v23 = vmul.f32 %v4325_v48, %v2469_v18  ;;  %v2731_v45 = vadd.f32 %v4344_v36, %v2682_v34 }
 0x1bf   : > { %v2508_v26 = vmul.f32 %v4325_v48, %v2470_v21  ;;  %v2729_v48 = vadd.f32 %v4344_v36, %v2670_v31  ;;  %v2732_v46 = vadd.f32 %v4344_v36, %v2688_v35  ;;  %v2790_v54 = vrot.slane %v2730_v42, 5 }
 0x1c0   : > { %v2689_v27 = vrot.slane %v2507_v23, 4  ;;  %v2791_v57 = vrot.slane %v2731_v45, 4 }
 0x1c1   : > { %v2695_v53 = vrot.slane %v2508_v26, 4  ;;  %v2789_v52 = vrot.slane %v2729_v48, 6  ;;  %v2792_v58 = vrot.slane %v2732_v46, 3 }
 0x1c2   : > { %v2690_v29 = vadd.f32 %v2689_v27, %v2507_v23 }
 0x1c3   : > { %v2696_v32 = vadd.f32 %v2695_v53, %v2508_v26  ;;  %v2824_v61 = vsel %vm2797_vm3, %v2789_v52, %v2790_v54  ;;  %v2826_v0 = vsel %vm2801_vm5, %v2791_v57, %v2792_v58 }
 0x1c4   : > { %v2691_v33 = vrot.slane %v2690_v29, 2  ;;  %v2825_v62 = vsel %vm2799_vm4, %v2823_v20, %v2824_v61 }
 0x1c5   : > { %v2697_v37 = vrot.slane %v2696_v32, 2 }
 0x1c6   : > { %v2692_v39 = vadd.f32 %v2691_v33, %v2690_v29 }
 0x1c7   : > { %v2698_v43 = vadd.f32 %v2697_v37, %v2696_v32 }
 0x1c8   : > { %v2693_v44 = vrot.slane %v2692_v39, 1 }
 0x1c9   : > { %v2699_v47 = vrot.slane %v2698_v43, 1 }
 0x1ca   : > { %v2694_v50 = vadd.f32 %v2693_v44, %v2692_v39 }
 0x1cb   : > { %v2700_v55 = vadd.f32 %v2699_v47, %v2698_v43 }
 0x1cc   : > { %v2733_v56 = vadd.f32 %v4344_v36, %v2694_v50 }
 0x1cd   : > { %v2734_v59 = vadd.f32 %v4344_v36, %v2700_v55 }
 0x1ce   : > { %v2793_v60 = vrot.slane %v2733_v56, 2 }
 0x1cf   : > { %v2794_v63 = vrot.slane %v2734_v59, 1 }
 0x1d1   : > { %v2827_v1 = vsel %vm2803_vm6, %v2793_v60, %v2794_v63 }
 0x1d2   : > { %v2828_v3 = vsel %vm2805_vm7, %v2826_v0, %v2827_v1 }
 0x1d3   : > { %v2829_v4 = vsel %vm2807_vm8, %v2825_v62, %v2828_v3 }
 0x1d4   : > { %2837 = vst [vmem:[%s4408_s30 + $0x18] sm:$0xff] %v2829_v4 }
 0x1d5 PF: > { %s28_s13 = sadd.s32 1, %s3398_s13  }
 0x1d6   : > { %p25_p13 = scmp.ge.s32.totalorder %s28_s13, 4  }
 0x1d8   :  { %27 = sbr.rel (!%p25_p13) target bundleno = 7 (0x7), region = 102 }
 0x1dd   :  { %2858 = vsyncpa [#allocation5], 1 }
 0x1de   :  { %2860 = vsyncpa [#allocation5 + $0x1], 1 }

</bundles_post_ra>
